<compile_context>
chip_gen: v7x
topology: tpu7x:2x2x1
jax: 0.10.0
libtpu: 0.0.40
codegen_flags: <defaults>
</compile_context>

<pallas_src>
import functools

import numpy as np
import jax
import jax.numpy as jnp
from jax.experimental import pallas as pl
from jax.experimental.pallas import tpu as pltpu

EPS = 0.003
_HIGHEST = jax.lax.Precision.HIGHEST


def _round_up(x, m):
    return ((x + m - 1) // m) * m


def policy_kernel(state_ref,
                  w1_ref, b1_ref, w2_ref, b2_ref,
                  wh1_ref, bh1_ref, wh2_ref, bh2_ref,
                  out_ref, *, action_dim):
    """One batch tile. out_ref holds [mu | sigma^2 | zero-pad] (128 lanes)."""
    x = state_ref[...]

    # fc1 + relu
    h1 = jnp.dot(x, w1_ref[...], precision=_HIGHEST,
                 preferred_element_type=jnp.float32) + b1_ref[...]
    h1 = jnp.maximum(h1, 0.0)

    # fc2 + relu
    h2 = jnp.dot(h1, w2_ref[...], precision=_HIGHEST,
                 preferred_element_type=jnp.float32) + b2_ref[...]
    h2 = jnp.maximum(h2, 0.0)

    # fused heads: hidden = relu(h2 @ [wm1|ws1] + [bm1|bs1])   -> [tile, 128]
    hs = jnp.dot(h2, wh1_ref[...], precision=_HIGHEST,
                 preferred_element_type=jnp.float32) + bh1_ref[...]
    hs = jnp.maximum(hs, 0.0)

    # out = hs @ [blockdiag(wm2, ws2) | 0] + [bm2|bs2|0]  -> [tile, 128]
    out = jnp.dot(hs, wh2_ref[...], precision=_HIGHEST,
                  preferred_element_type=jnp.float32) + bh2_ref[...]

    # Lanes [0, a): mu (pass-through). Lanes [a, 2a): sigma -> clamp, square.
    # Lanes [2a, 128): zeros (from zero-padded weights) -> stay zero.
    lane = jax.lax.broadcasted_iota(jnp.int32, out.shape, 1)
    sg = jnp.clip(out, -1.0, 1.0)
    out_ref[...] = jnp.where(lane < action_dim, out, sg * sg).astype(out_ref.dtype)


def _pack_head_params(params, out_pad):
    """Fuse the mu/sigma heads into two wide matmuls, zero-padded to out_pad lanes."""
    a = params["wm2"].shape[1]
    wh1 = jnp.concatenate([params["wm1"], params["ws1"]], axis=1)          # [128, 128]
    bh1 = jnp.concatenate([params["bm1"], params["bs1"]], axis=1)          # [1, 128]
    wh2 = jnp.zeros((128, out_pad), jnp.float32)
    wh2 = wh2.at[:64, :a].set(params["wm2"])
    wh2 = wh2.at[64:, a:2 * a].set(params["ws2"])                          # block-diag
    bh2 = jnp.zeros((1, out_pad), jnp.float32)
    bh2 = bh2.at[:, :2 * a].set(
        jnp.concatenate([params["bm2"], params["bs2"]], axis=1))
    return wh1, bh1, wh2, bh2


def policy_forward(state, params, tile_n=2048):
    """state: [n, state_dim] f32. params: dict of weights/biases (see init).

    Returns (mu, var), each [n, action_dim] f32.
    """
    n, state_dim = state.shape
    action_dim = params["wm2"].shape[1]
    out_pad = max(128, _round_up(2 * action_dim, 128))    # lane-dense output width

    wh1, bh1, wh2, bh2 = _pack_head_params(params, out_pad)

    # Batch tiling: rows in multiples of 8; pad the batch so the grid divides
    # evenly. Small batches collapse to a single grid step; for n >= 16 cap
    # the tile so there are >= 2 steps (v7x megacore gets work on both TCs).
    tile = min(int(tile_n), _round_up(n, 8))
    if n >= 16:
        tile = min(tile, _round_up(max(n // 2, 8), 8))
    tile = max(8, _round_up(tile, 8))
    padded_n = _round_up(n, tile)
    if padded_n != n:
        state = jnp.pad(state, ((0, padded_n - n), (0, 0)))
    grid = (padded_n // tile,)

    def const_spec(shape):
        return pl.BlockSpec(shape, lambda i: (0, 0))

    in_specs = [
        pl.BlockSpec((tile, state_dim), lambda i: (i, 0)),   # state tile (pipelined)
        const_spec(params["w1"].shape), const_spec(params["b1"].shape),
        const_spec(params["w2"].shape), const_spec(params["b2"].shape),
        const_spec(wh1.shape), const_spec(bh1.shape),
        const_spec(wh2.shape), const_spec(bh2.shape),
    ]
    out_spec = pl.BlockSpec((tile, out_pad), lambda i: (i, 0))

    out = pl.pallas_call(
        functools.partial(policy_kernel, action_dim=action_dim),
        out_shape=jax.ShapeDtypeStruct((padded_n, out_pad), jnp.float32),
        grid=grid,
        in_specs=in_specs,
        out_specs=out_spec,
        compiler_params=pltpu.CompilerParams(
            dimension_semantics=("parallel",),
            vmem_limit_bytes=32 * 1024 * 1024),
    )(state,
      params["w1"], params["b1"], params["w2"], params["b2"],
      wh1, bh1, wh2, bh2)

    mu = out[:n, :action_dim]
    var = out[:n, action_dim:2 * action_dim]
    return mu, var


def init_policy_params(key, state_dim, action_dim):
    """Deterministic init mirroring the PyTorch module's __init__.

    PyTorch Linear weight is [out, in]; here we store [in, out].
    fanin_init -> U(-1/sqrt(fan_in), 1/sqrt(fan_in)) on weights.
    mu2/sigma2 weights -> U(-EPS, EPS).
    Biases use PyTorch's default Linear bias init U(-1/sqrt(fan_in), 1/sqrt(fan_in)).
    """
    ks = jax.random.split(key, 12)

    def u(k, shape, bound):
        return jax.random.uniform(k, shape, jnp.float32, -bound, bound)

    def fan_bound(fan_in):
        return 1.0 / np.sqrt(fan_in)

    params = {
        "w1":  u(ks[0], (state_dim, 256), fan_bound(state_dim)),
        "b1":  u(ks[1], (1, 256),        fan_bound(state_dim)),
        "w2":  u(ks[2], (256, 128),      fan_bound(256)),
        "b2":  u(ks[3], (1, 128),        fan_bound(256)),
        "wm1": u(ks[4], (128, 64),       fan_bound(128)),
        "bm1": u(ks[5], (1, 64),         fan_bound(128)),
        "wm2": u(ks[6], (64, action_dim), EPS),
        "bm2": u(ks[7], (1, action_dim),  fan_bound(64)),
        "ws1": u(ks[8], (128, 64),       fan_bound(128)),
        "bs1": u(ks[9], (1, 64),         fan_bound(128)),
        "ws2": u(ks[10], (64, action_dim), EPS),
        "bs2": u(ks[11], (1, action_dim),  fan_bound(64)),
    }
    return params


def policy_forward_ref(state, p):
    """Pure-JAX reference (f32, highest precision) for correctness check."""
    hp = _HIGHEST

    def mm(a, b):
        return jnp.dot(a, b, precision=hp, preferred_element_type=jnp.float32)

    x = jax.nn.relu(mm(state, p["w1"]) + p["b1"])
    x = jax.nn.relu(mm(x, p["w2"]) + p["b2"])
    mu = mm(jax.nn.relu(mm(x, p["wm1"]) + p["bm1"]), p["wm2"]) + p["bm2"]
    sg = mm(jax.nn.relu(mm(x, p["ws1"]) + p["bs1"]), p["ws2"]) + p["bs2"]
    sg = jnp.clip(sg, -1.0, 1.0)
    return mu, sg * sg


if __name__ == "__main__":
    key = jax.random.PRNGKey(0)
    k_param, k_state1, k_state2, k_state3 = jax.random.split(key, 4)

    state_dim, action_dim = 32, 8
    params = init_policy_params(k_param, state_dim, action_dim)

    # Small batch (single grid step).
    batch = 8
    state = jax.random.normal(k_state1, (batch, state_dim), jnp.float32)
    mu, var = policy_forward(state, params)
    jax.block_until_ready((mu, var))
    mu_ref, var_ref = policy_forward_ref(state, params)
    np.testing.assert_allclose(np.asarray(mu), np.asarray(mu_ref), rtol=1e-5, atol=1e-5)
    np.testing.assert_allclose(np.asarray(var), np.asarray(var_ref), rtol=1e-5, atol=1e-5)
    assert mu.shape == (batch, action_dim) and var.shape == (batch, action_dim)

    # Non-multiple batch exercising the batch grid + padding path (explicit tile).
    batch2 = 50
    state2 = jax.random.normal(k_state2, (batch2, state_dim), jnp.float32)
    mu2, var2 = policy_forward(state2, params, tile_n=16)
    jax.block_until_ready((mu2, var2))
    mu2_ref, var2_ref = policy_forward_ref(state2, params)
    np.testing.assert_allclose(np.asarray(mu2), np.asarray(mu2_ref), rtol=1e-5, atol=1e-5)
    np.testing.assert_allclose(np.asarray(var2), np.asarray(var2_ref), rtol=1e-5, atol=1e-5)
    assert mu2.shape == (batch2, action_dim) and var2.shape == (batch2, action_dim)

    # Medium batch with default tiling: exercises the >=2-step (megacore) path.
    batch3 = 300
    state3 = jax.random.normal(k_state3, (batch3, state_dim), jnp.float32)
    mu3, var3 = policy_forward(state3, params)
    jax.block_until_ready((mu3, var3))
    mu3_ref, var3_ref = policy_forward_ref(state3, params)
    np.testing.assert_allclose(np.asarray(mu3), np.asarray(mu3_ref), rtol=1e-5, atol=1e-5)
    np.testing.assert_allclose(np.asarray(var3), np.asarray(var3_ref), rtol=1e-5, atol=1e-5)
    assert mu3.shape == (batch3, action_dim) and var3.shape == (batch3, action_dim)

    print("KERNEL_OK")
</pallas_src>

<mosaic_0001>
module attributes {stable_mosaic.version = 11 : i64} {
  func.func @policy_kernel(%arg0: i32, %arg1: memref<8x32xf32, #tpu.memory_space<vmem>>, %arg2: memref<32x256xf32, #tpu.memory_space<vmem>>, %arg3: memref<1x256xf32, #tpu.memory_space<vmem>>, %arg4: memref<256x128xf32, #tpu.memory_space<vmem>>, %arg5: memref<1x128xf32, #tpu.memory_space<vmem>>, %arg6: memref<128x128xf32, #tpu.memory_space<vmem>>, %arg7: memref<1x128xf32, #tpu.memory_space<vmem>>, %arg8: memref<128x128xf32, #tpu.memory_space<vmem>>, %arg9: memref<1x128xf32, #tpu.memory_space<vmem>>, %arg10: memref<8x128xf32, #tpu.memory_space<vmem>>) attributes {dimension_semantics = [#tpu.dimension_semantics<parallel>], iteration_bounds = array<i64: 1>, scalar_prefetch = 0 : i64, scratch_operands = 0 : i64, tpu.core_type = #tpu.core_type<tc>, window_params = [{transform_indices = @transform_0, window_bounds = array<i64: 8, 32>}, {pipeline_mode = #tpu.pipeline_mode<synchronous>, transform_indices = @transform_1, window_bounds = array<i64: 32, 256>}, {pipeline_mode = #tpu.pipeline_mode<synchronous>, transform_indices = @transform_2, window_bounds = array<i64: 1, 256>}, {pipeline_mode = #tpu.pipeline_mode<synchronous>, transform_indices = @transform_3, window_bounds = array<i64: 256, 128>}, {pipeline_mode = #tpu.pipeline_mode<synchronous>, transform_indices = @transform_4, window_bounds = array<i64: 1, 128>}, {pipeline_mode = #tpu.pipeline_mode<synchronous>, transform_indices = @transform_5, window_bounds = array<i64: 128, 128>}, {pipeline_mode = #tpu.pipeline_mode<synchronous>, transform_indices = @transform_6, window_bounds = array<i64: 1, 128>}, {pipeline_mode = #tpu.pipeline_mode<synchronous>, transform_indices = @transform_7, window_bounds = array<i64: 128, 128>}, {pipeline_mode = #tpu.pipeline_mode<synchronous>, transform_indices = @transform_8, window_bounds = array<i64: 1, 128>}, {transform_indices = @transform_9, window_bounds = array<i64: 8, 128>}]} {
    %c0 = arith.constant 0 : index
    %c0_0 = arith.constant 0 : index
    %0 = vector.load %arg1[%c0, %c0_0] : memref<8x32xf32, #tpu.memory_space<vmem>>, vector<8x32xf32>
    %c0_1 = arith.constant 0 : index
    %c0_2 = arith.constant 0 : index
    %1 = vector.load %arg2[%c0_1, %c0_2] : memref<32x256xf32, #tpu.memory_space<vmem>>, vector<32x256xf32>
    %cst = arith.constant dense<0.000000e+00> : vector<8x256xf32>
    %2 = tpu.matmul %0, %1, %cst {dimension_numbers = #tpu.dot_dimension_numbers<[1], [0], [0], [1], [0, 0, 1, 1], [], []>, precision = #tpu.contract_precision<fp32>} : vector<8x32xf32>, vector<32x256xf32>, vector<8x256xf32> -> vector<8x256xf32>
    %c0_3 = arith.constant 0 : index
    %c0_4 = arith.constant 0 : index
    %3 = vector.load %arg3[%c0_3, %c0_4] : memref<1x256xf32, #tpu.memory_space<vmem>>, vector<1x256xf32>
    %4 = vector.broadcast %3 : vector<1x256xf32> to vector<8x256xf32>
    %5 = arith.addf %2, %4 : vector<8x256xf32>
    %cst_5 = arith.constant 0.000000e+00 : f32
    %6 = vector.broadcast %cst_5 : f32 to vector<8x256xf32>
    %7 = arith.maximumf %5, %6 : vector<8x256xf32>
    %c0_6 = arith.constant 0 : index
    %c0_7 = arith.constant 0 : index
    %8 = vector.load %arg4[%c0_6, %c0_7] : memref<256x128xf32, #tpu.memory_space<vmem>>, vector<256x128xf32>
    %cst_8 = arith.constant dense<0.000000e+00> : vector<8x128xf32>
    %9 = tpu.matmul %7, %8, %cst_8 {dimension_numbers = #tpu.dot_dimension_numbers<[1], [0], [0], [1], [0, 0, 1, 1], [], []>, precision = #tpu.contract_precision<fp32>} : vector<8x256xf32>, vector<256x128xf32>, vector<8x128xf32> -> vector<8x128xf32>
    %c0_9 = arith.constant 0 : index
    %c0_10 = arith.constant 0 : index
    %10 = vector.load %arg5[%c0_9, %c0_10] : memref<1x128xf32, #tpu.memory_space<vmem>>, vector<1x128xf32>
    %11 = vector.broadcast %10 : vector<1x128xf32> to vector<8x128xf32>
    %12 = arith.addf %9, %11 : vector<8x128xf32>
    %cst_11 = arith.constant 0.000000e+00 : f32
    %13 = vector.broadcast %cst_11 : f32 to vector<8x128xf32>
    %14 = arith.maximumf %12, %13 : vector<8x128xf32>
    %c0_12 = arith.constant 0 : index
    %c0_13 = arith.constant 0 : index
    %15 = vector.load %arg6[%c0_12, %c0_13] : memref<128x128xf32, #tpu.memory_space<vmem>>, vector<128x128xf32>
    %cst_14 = arith.constant dense<0.000000e+00> : vector<8x128xf32>
    %16 = tpu.matmul %14, %15, %cst_14 {dimension_numbers = #tpu.dot_dimension_numbers<[1], [0], [0], [1], [0, 0, 1, 1], [], []>, precision = #tpu.contract_precision<fp32>} : vector<8x128xf32>, vector<128x128xf32>, vector<8x128xf32> -> vector<8x128xf32>
    %c0_15 = arith.constant 0 : index
    %c0_16 = arith.constant 0 : index
    %17 = vector.load %arg7[%c0_15, %c0_16] : memref<1x128xf32, #tpu.memory_space<vmem>>, vector<1x128xf32>
    %18 = vector.broadcast %17 : vector<1x128xf32> to vector<8x128xf32>
    %19 = arith.addf %16, %18 : vector<8x128xf32>
    %cst_17 = arith.constant 0.000000e+00 : f32
    %20 = vector.broadcast %cst_17 : f32 to vector<8x128xf32>
    %21 = arith.maximumf %19, %20 : vector<8x128xf32>
    %c0_18 = arith.constant 0 : index
    %c0_19 = arith.constant 0 : index
    %22 = vector.load %arg8[%c0_18, %c0_19] : memref<128x128xf32, #tpu.memory_space<vmem>>, vector<128x128xf32>
    %cst_20 = arith.constant dense<0.000000e+00> : vector<8x128xf32>
    %23 = tpu.matmul %21, %22, %cst_20 {dimension_numbers = #tpu.dot_dimension_numbers<[1], [0], [0], [1], [0, 0, 1, 1], [], []>, precision = #tpu.contract_precision<fp32>} : vector<8x128xf32>, vector<128x128xf32>, vector<8x128xf32> -> vector<8x128xf32>
    %c0_21 = arith.constant 0 : index
    %c0_22 = arith.constant 0 : index
    %24 = vector.load %arg9[%c0_21, %c0_22] : memref<1x128xf32, #tpu.memory_space<vmem>>, vector<1x128xf32>
    %25 = vector.broadcast %24 : vector<1x128xf32> to vector<8x128xf32>
    %26 = arith.addf %23, %25 : vector<8x128xf32>
    %27 = tpu.iota {dimensions = array<i32: 1>} : vector<8x128xi32>
    %cst_23 = arith.constant -1.000000e+00 : f32
    %cst_24 = arith.constant 1.000000e+00 : f32
    %28 = vector.broadcast %cst_23 : f32 to vector<8x128xf32>
    %29 = arith.maximumf %28, %26 : vector<8x128xf32>
    %30 = vector.broadcast %cst_24 : f32 to vector<8x128xf32>
    %31 = arith.minimumf %30, %29 : vector<8x128xf32>
    %c8_i32 = arith.constant 8 : i32
    %32 = vector.broadcast %c8_i32 : i32 to vector<8x128xi32>
    %33 = arith.cmpi slt, %27, %32 : vector<8x128xi32>
    %34 = arith.mulf %31, %31 : vector<8x128xf32>
    %35 = arith.select %33, %26, %34 : vector<8x128xi1>, vector<8x128xf32>
    %c0_25 = arith.constant 0 : index
    %c0_26 = arith.constant 0 : index
    %36 = vector.load %arg10[%c0_25, %c0_26] : memref<8x128xf32, #tpu.memory_space<vmem>>, vector<8x128xf32>
    tpu.vector_store %arg10[%c0_25, %c0_26], %35 {strides = array<i32>} : memref<8x128xf32, #tpu.memory_space<vmem>>, vector<8x128xf32>,
    return
  }
  func.func @transform_0(%arg0: i32) -> (i32, i32) {
    %c0_i32 = arith.constant 0 : i32
    %c0_i32_0 = arith.constant 0 : i32
    return %arg0, %c0_i32 : i32, i32
  }
  func.func @transform_1(%arg0: i32) -> (i32, i32) {
    %c0_i32 = arith.constant 0 : i32
    %c0_i32_0 = arith.constant 0 : i32
    %c0_i32_1 = arith.constant 0 : i32
    return %c0_i32, %c0_i32_0 : i32, i32
  }
  func.func @transform_2(%arg0: i32) -> (i32, i32) {
    %c0_i32 = arith.constant 0 : i32
    %c0_i32_0 = arith.constant 0 : i32
    %c0_i32_1 = arith.constant 0 : i32
    return %c0_i32, %c0_i32_0 : i32, i32
  }
  func.func @transform_3(%arg0: i32) -> (i32, i32) {
    %c0_i32 = arith.constant 0 : i32
    %c0_i32_0 = arith.constant 0 : i32
    %c0_i32_1 = arith.constant 0 : i32
    return %c0_i32, %c0_i32_0 : i32, i32
  }
  func.func @transform_4(%arg0: i32) -> (i32, i32) {
    %c0_i32 = arith.constant 0 : i32
    %c0_i32_0 = arith.constant 0 : i32
    %c0_i32_1 = arith.constant 0 : i32
    return %c0_i32, %c0_i32_0 : i32, i32
  }
  func.func @transform_5(%arg0: i32) -> (i32, i32) {
    %c0_i32 = arith.constant 0 : i32
    %c0_i32_0 = arith.constant 0 : i32
    %c0_i32_1 = arith.constant 0 : i32
    return %c0_i32, %c0_i32_0 : i32, i32
  }
  func.func @transform_6(%arg0: i32) -> (i32, i32) {
    %c0_i32 = arith.constant 0 : i32
    %c0_i32_0 = arith.constant 0 : i32
    %c0_i32_1 = arith.constant 0 : i32
    return %c0_i32, %c0_i32_0 : i32, i32
  }
  func.func @transform_7(%arg0: i32) -> (i32, i32) {
    %c0_i32 = arith.constant 0 : i32
    %c0_i32_0 = arith.constant 0 : i32
    %c0_i32_1 = arith.constant 0 : i32
    return %c0_i32, %c0_i32_0 : i32, i32
  }
  func.func @transform_8(%arg0: i32) -> (i32, i32) {
    %c0_i32 = arith.constant 0 : i32
    %c0_i32_0 = arith.constant 0 : i32
    %c0_i32_1 = arith.constant 0 : i32
    return %c0_i32, %c0_i32_0 : i32, i32
  }
  func.func @transform_9(%arg0: i32) -> (i32, i32) {
    %c0_i32 = arith.constant 0 : i32
    %c0_i32_0 = arith.constant 0 : i32
    return %arg0, %c0_i32 : i32, i32
  }
}

</mosaic_0001>

<bundles_post_ra>
// kernel: tpu_custom_call.1
= control target key start
LH: loop header
LB: loop body
LE: loop exit
PB: predicated region body
PF: predicated region fallthrough
CT: control target
= control target key end

     0   :  { %14 = vsyncpa [#allocation3], 0  ;;  %s5656_s0 = inlined_call_operand.hbm [shape: f32[8,32], index: 0, kind: input, shape index: {}]   ;;  %s5657_s1 = inlined_call_operand.hbm [shape: f32[32,256], index: 1, kind: input, shape index: {}]   ;;  %s5658_s2 = inlined_call_operand.vmem [shape: f32[1,256], index: 2, kind: input, shape index: {}]   ;;  %s5659_s3 = inlined_call_operand.hbm [shape: f32[256,128], index: 3, kind: input, shape index: {}]   ;;  %s5660_s4 = inlined_call_operand.vmem [shape: f32[1,128], index: 4, kind: input, shape index: {}]   ;;  %s5661_s5 = inlined_call_operand.hbm [shape: f32[128,128], index: 5, kind: input, shape index: {}]   ;;  %s5662_s6 = inlined_call_operand.vmem [shape: f32[1,128], index: 6, kind: input, shape index: {}]   ;;  %s5663_s7 = inlined_call_operand.hbm [shape: f32[128,128], index: 7, kind: input, shape index: {}]   ;;  %s5664_s8 = inlined_call_operand.vmem [shape: f32[1,128], index: 8, kind: input, shape index: {}]   ;;  %s5665_s9 = inlined_call_operand.hbm [shape: f32[8,128], index: 9, kind: output, shape index: {}]  }
   0x1   :  { %15 = vsyncpa [#allocation6], 0 }
   0x2   :  { %16 = vsyncpa [#allocation9], 0 }
   0x3   :  { %17 = vsyncpa [#allocation4], 0  ;;  %s4478_s30 = smov [#allocation5]   ;;  %s4338_s13 = scalar_lea.hbm %s5657_s1, 1024 }
   0x4   :  { %s33_s10 = sshll.u32 %s4478_s30, 4  ;;  %p4339_p0 = scmp.ne.s32.totalorder %s5657_s1, %s4338_s13  ;;  %s34_s10 = int_to_ptr.vmem [resolvable:$true] %s33_s10 }
   0x5   :  { %p4342_p1 = scmp.lt.u32.totalorder %s4338_s13, %s5657_s1 }
   0x7   :  { %p4344_p2 = pnand %p4342_p1, %p4339_p0 }
   0x9   :  { %4347 = shalt.err (!%p4344_p2)
}
   0xa   :  { %s4348_s18 = scalar_lea.vmem %s34_s10, 1024  ;;  %p4353_p4 = scmp.lt.s32.totalorder %s34_s10, %s34_s10 }
   0xb   :  { %p4349_p3 = scmp.ne.s32.totalorder %s34_s10, %s4348_s18  ;;  %p4354_p5 = scmp.lt.s32.totalorder %s4348_s18, %s4348_s18 }
   0xd   :  { %p4355_p6 = por %p4354_p5, %p4353_p4 }
   0xf   :  { %p4356_p7 = pnand %p4355_p6, %p4349_p3 }
  0x11   :  { %4359 = shalt.err (!%p4356_p7)
}
  0x12   :  { %s4479_s19 = smov 256   ;;  %s4480_s20 = smov 16  }
  0x13   :  { %39 = dma.hbm_to_vmem [thread:$0]  %s5657_s1, 1024, %s34_s10, [#allocation6], %s4479_s19, %s4479_s19, %s4480_s20  }
  0x14   :  { %s4481_s23 = smov [#allocation8]   ;;  %s4482_s25 = smov [#allocation2]  }
  0x15   :  { %s61_s24 = sshll.u32 %s4481_s23, 4  ;;  %s24_s26 = sshll.u32 %s4482_s25, 4  ;;  %s62_s24 = int_to_ptr.vmem [resolvable:$true] %s61_s24  ;;  %s25_s26 = int_to_ptr.vmem [resolvable:$true] %s24_s26 }
  0x16   :  { %s4360_s29 = scalar_lea.hbm %s5661_s5, 2048 }
  0x17   :  { %p4361_p8 = scmp.ne.s32.totalorder %s5661_s5, %s4360_s29  ;;  %p4364_p9 = scmp.lt.u32.totalorder %s4360_s29, %s5661_s5 }
  0x19   :  { %p4366_p10 = pnand %p4364_p9, %p4361_p8 }
  0x1b   :  { %4369 = shalt.err (!%p4366_p10)
}
  0x1c   :  { %s4370_s1 = scalar_lea.vmem %s62_s24, 2048  ;;  %p4375_p12 = scmp.lt.s32.totalorder %s62_s24, %s62_s24 }
  0x1d   :  { %p4371_p11 = scmp.ne.s32.totalorder %s62_s24, %s4370_s1  ;;  %p4376_p13 = scmp.lt.s32.totalorder %s4370_s1, %s4370_s1 }
  0x1f   :  { %p4377_p0 = por %p4376_p13, %p4375_p12 }
  0x21   :  { %p4378_p1 = pnand %p4377_p0, %p4371_p11 }
  0x23   :  { %4381 = shalt.err (!%p4378_p1)
}
  0x24   :  { %s4483_s10 = smov 128   ;;  %s4484_s14 = smov 8  }
  0x25   :  { %67 = dma.hbm_to_vmem [thread:$0]  %s5661_s5, 2048, %s62_s24, [#allocation9], %s4483_s10, %s4483_s10, %s4484_s14  }
  0x26   :  { %s4382_s19 = scalar_lea.hbm %s5656_s0, 128 }
  0x27   :  { %p4383_p2 = scmp.ne.s32.totalorder %s5656_s0, %s4382_s19  ;;  %p4386_p3 = scmp.lt.u32.totalorder %s4382_s19, %s5656_s0 }
  0x29   :  { %p4388_p4 = pnand %p4386_p3, %p4383_p2 }
  0x2b   :  { %4391 = shalt.err (!%p4388_p4)
}
  0x2c   :  { %s4392_s25 = scalar_lea.vmem %s25_s26, 128  ;;  %p4397_p6 = scmp.lt.s32.totalorder %s25_s26, %s25_s26 }
  0x2d   :  { %p4393_p5 = scmp.ne.s32.totalorder %s25_s26, %s4392_s25  ;;  %p4398_p7 = scmp.lt.s32.totalorder %s4392_s25, %s4392_s25 }
  0x2f   :  { %p4399_p8 = por %p4398_p7, %p4397_p6 }
  0x31   :  { %p4400_p9 = pnand %p4399_p8, %p4393_p5 }
  0x33   :  { %4403 = shalt.err (!%p4400_p9)
}
  0x34   :  { %27 = dma.hbm_to_vmem [thread:$0]  %s5656_s0, 128, %s25_s26, [#allocation3]  }
  0x35   :  { %s4485_s27 = smov [#allocation7]   ;;  %s4486_s29 = smov [#allocation10]  }
  0x36   :  { %s47_s28 = sshll.u32 %s4485_s27, 4  ;;  %s75_s30 = sshll.u32 %s4486_s29, 4  ;;  %s48_s28 = int_to_ptr.vmem [resolvable:$true] %s47_s28  ;;  %s76_s30 = int_to_ptr.vmem [resolvable:$true] %s75_s30 }
  0x37   :  { %s4404_s13 = scalar_lea.hbm %s5659_s3, 4096 }
  0x38   :  { %p4405_p10 = scmp.ne.s32.totalorder %s5659_s3, %s4404_s13  ;;  %p4408_p11 = scmp.lt.u32.totalorder %s4404_s13, %s5659_s3 }
  0x3a   :  { %p4410_p12 = pnand %p4408_p11, %p4405_p10 }
  0x3c   :  { %4413 = shalt.err (!%p4410_p12)
}
  0x3d   :  { %s4414_s0 = scalar_lea.vmem %s48_s28, 4096  ;;  %p4419_p0 = scmp.lt.s32.totalorder %s48_s28, %s48_s28 }
  0x3e   :  { %p4415_p13 = scmp.ne.s32.totalorder %s48_s28, %s4414_s0  ;;  %p4420_p1 = scmp.lt.s32.totalorder %s4414_s0, %s4414_s0 }
  0x40   :  { %p4421_p2 = por %p4420_p1, %p4419_p0 }
  0x42   :  { %p4422_p3 = pnand %p4421_p2, %p4415_p13 }
  0x44   :  { %4425 = shalt.err (!%p4422_p3)
}
  0x45   :  { %53 = dma.hbm_to_vmem [thread:$0]  %s5659_s3, 4096, %s48_s28, [#allocation6], %s4483_s10, %s4483_s10, %s4484_s14  }
  0x46   :  { %s4426_s21 = scalar_lea.hbm %s5663_s7, 2048 }
  0x47   :  { %p4427_p4 = scmp.ne.s32.totalorder %s5663_s7, %s4426_s21  ;;  %p4430_p5 = scmp.lt.u32.totalorder %s4426_s21, %s5663_s7 }
  0x49   :  { %p4432_p6 = pnand %p4430_p5, %p4427_p4 }
  0x4b   :  { %4435 = shalt.err (!%p4432_p6)
}
  0x4c   :  { %s4436_s24 = scalar_lea.vmem %s76_s30, 2048  ;;  %p4441_p8 = scmp.lt.s32.totalorder %s76_s30, %s76_s30 }
  0x4d   :  { %p4437_p7 = scmp.ne.s32.totalorder %s76_s30, %s4436_s24  ;;  %p4442_p9 = scmp.lt.s32.totalorder %s4436_s24, %s4436_s24 }
  0x4f   :  { %p4443_p10 = por %p4442_p9, %p4441_p8 }
  0x51   :  { %p4444_p11 = pnand %p4443_p10, %p4437_p7 }
  0x53   :  { %4447 = shalt.err (!%p4444_p11)
}
  0x54   :  { %81 = dma.hbm_to_vmem [thread:$0]  %s5663_s7, 2048, %s76_s30, [#allocation9], %s4483_s10, %s4483_s10, %s4484_s14  }
  0x55   :  { %4470 = dma.done.wait [#allocation3], 128  }
  0x56   :  { %4471 = vsyncadd [#allocation3], 4294967168 }
  0x57   :  { %4472 = dma.done.wait [#allocation6], 5120  }
  0x58   :  { %4473 = vsyncadd [#allocation6], 4294962176 }
  0x59   :  { %4474 = dma.done.wait [#allocation9], 4096  }
  0x5a   :  { %4475 = vsyncadd [#allocation9], 4294963200  ;;  %v5669_v0 = vmov 0.0   ;;  %v101_v1 = vld [vmem:[#allocation5 + $0x8] sm:$0xff]  ;;  %v103_v2 = vld [vmem:[#allocation5 + $0x18] sm:$0xff]  ;;  %vm120_vm0 = vcmask 261120  }
  0x5b   :  { %196 = vmatprep.mubr.f32.mxu0 %v5669_v0  ;;  %v100_v3 = vld [vmem:[#allocation5] sm:$0xff]  ;;  %v124_v4 = vand.u32 4294901760, %v101_v1  ;;  %v128_v5 = vand.u32 4294901760, %v103_v2  ;;  %v102_v6 = vld [vmem:[#allocation5 + $0x10] sm:$0xff]  ;;  %v105_v8 = vld [vmem:[#allocation5 + $0x28] sm:$0xff]  ;;  %vm4489_vm1 = vmmov 0  }
  0x5c   :  { %v126_v7 = vand.u32 4294901760, %v100_v3  ;;  %v107_v9 = vld [vmem:[#allocation5 + $0x38] sm:$0xff]  ;;  %v130_v10 = vand.u32 4294901760, %v102_v6  ;;  %v132_v11 = vand.u32 4294901760, %v105_v8  ;;  %v104_v13 = vld [vmem:[#allocation5 + $0x20] sm:$0xff]  ;;  %v106_v14 = vld [vmem:[#allocation5 + $0x30] sm:$0xff] }
  0x5d   :  { %v136_v12 = vand.u32 4294901760, %v107_v9  ;;  %v99_v15 = vld [vmem:[#allocation2] sm:$0xff]  ;;  %v4611_v16 = vpack.c.bf16 %v128_v5, %v124_v4  ;;  %v4613_v17 = vsub.f32 %v101_v1, %v124_v4  ;;  %v4615_v18 = vsub.f32 %v103_v2, %v128_v5  ;;  %v4681_v62 = vld [vmem:[#allocation7 + $0x80] sm:$0xff]  ;;  %v4683_v63 = vld [vmem:[#allocation7 + $0x88] sm:$0xff]  ;;  %s4490_s30 = smov [#allocation11]  }
  0x5e   :  { %v4617_v19 = vsub.f32 %v100_v3, %v126_v7  ;;  %v4619_v20 = vpack.c.bf16 %v130_v10, %v126_v7  ;;  %v4621_v21 = vsub.f32 %v102_v6, %v130_v10  ;;  %v4625_v23 = vsub.f32 %v105_v8, %v132_v11  ;;  %v4685_v2 = vld [vmem:[#allocation7] sm:$0xff]  ;;  %v4687_v3 = vld [vmem:[#allocation7 + $0x8] sm:$0xff]  ;;  %v4690_v4 = vld [vmem:[#allocation7 + $0x90] sm:$0xff]  ;;  %s2914_s11 = sshll.u32 %s4490_s30, 4  ;;  %s2915_s11 = int_to_ptr.vmem [resolvable:$true] %s2914_s11 }
  0x5f   :  { %v4623_v22 = vpack.c.bf16 %v136_v12, %v132_v11  ;;  %3764 = vmatprep.subr.bf16.mxu0 %v4611_v16  ;;  %v4628_v24 = vsub.f32 %v107_v9, %v136_v12  ;;  %v134_v25 = vand.u32 4294901760, %v104_v13  ;;  %v138_v26 = vand.u32 4294901760, %v106_v14  ;;  %v4696_v9 = vld [vmem:[#allocation7 + $0x98] sm:$0xff]  ;;  %v4698_v10 = vld [vmem:[#allocation7 + $0x10] sm:$0xff]  ;;  %s4448_s12 = scalar_lea.vmem %s2915_s11, 128  ;;  %p4453_p13 = scmp.lt.s32.totalorder %s2915_s11, %s2915_s11 }
  0x60   :  { %v122_v27 = vsel %vm120_vm0, %v99_v15, 0  ;;  %3766 = vmatpush1.bf16.msra.mxu0 %v4619_v20  ;;  %v210_v29 = vand.u32 4294901760, %v4613_v17  ;;  %v222_v30 = vand.u32 4294901760, %v4615_v18  ;;  %v216_v31 = vand.u32 4294901760, %v4617_v19  ;;  %v4700_v11 = vld [vmem:[#allocation7 + $0x18] sm:$0xff]  ;;  %p4449_p12 = scmp.ne.s32.totalorder %s2915_s11, %s4448_s12  ;;  %p4454_p0 = scmp.lt.s32.totalorder %s4448_s12, %s4448_s12 }
  0x61   :  { %v4632_v28 = vand.u32 4294901760, %v122_v27  ;;  %3768 = vmatprep.subr.bf16.mxu0 %v4623_v22  ;;  %v4638_v32 = vpack.c.bf16 %v138_v26, %v134_v25  ;;  %v4640_v33 = vsub.f32 %v104_v13, %v134_v25  ;;  %v4642_v34 = vsub.f32 %v106_v14, %v138_v26 }
  0x62   :  { %v228_v35 = vand.u32 4294901760, %v4621_v21  ;;  %v211_v37 = vsub.f32 %v4613_v17, %v210_v29  ;;  %v223_v38 = vsub.f32 %v4615_v18, %v222_v30  ;;  %v217_v39 = vsub.f32 %v4617_v19, %v216_v31  ;;  %p4455_p1 = por %p4454_p0, %p4453_p13 }
  0x63   :  { %v4646_v36 = vsub.f32 %v122_v27, %v4632_v28  ;;  %v234_v41 = vand.u32 4294901760, %v4625_v23  ;;  %v246_v42 = vand.u32 4294901760, %v4628_v24  ;;  %v240_v43 = vand.u32 4294901760, %v4640_v33 }
  0x64   :  { %v229_v40 = vsub.f32 %v4621_v21, %v228_v35  ;;  %3770 = vmatpush1.bf16.msra.mxu0 %v4638_v32  ;;  %v212_v45 = vand.u32 4294901760, %v211_v37  ;;  %v224_v46 = vand.u32 4294901760, %v223_v38  ;;  %v218_v47 = vand.u32 4294901760, %v217_v39  ;;  %v4722_v39 = vld [vmem:[#allocation7 + $0xa0] sm:$0xff]  ;;  %p4456_p2 = pnand %p4455_p1, %p4449_p12 }
  0x65   :  { %v199_v44 = vand.u32 4294901760, %v4646_v36  ;;  %v235_v49 = vsub.f32 %v4625_v23, %v234_v41  ;;  %v247_v50 = vsub.f32 %v4628_v24, %v246_v42  ;;  %v241_v51 = vsub.f32 %v4640_v33, %v240_v43 }
  0x66   :  { %v230_v48 = vand.u32 4294901760, %v229_v40  ;;  %v3771_v53 = vpack.c.bf16 %v224_v46, %v212_v45  ;;  %v252_v54 = vand.u32 4294901760, %v4642_v34  ;;  %v3779_v6 = vpack.c.bf16 %v4615_v18, %v4613_v17  ;;  %v4724_v40 = vld [vmem:[#allocation7 + $0xa8] sm:$0xff]  ;;  %v4730_v46 = vld [vmem:[#allocation7 + $0x20] sm:$0xff] }
  0x67   :  { %v200_v52 = vsub.f32 %v4646_v36, %v199_v44  ;;  %v236_v56 = vand.u32 4294901760, %v235_v49  ;;  %v248_v57 = vand.u32 4294901760, %v247_v50  ;;  %v242_v59 = vand.u32 4294901760, %v241_v51 }
  0x68   :  { %v3773_v55 = vpack.c.bf16 %v230_v48, %v218_v47  ;;  %3772 = vmatprep.subr.bf16.mxu0 %v3771_v53  ;;  %v253_v60 = vsub.f32 %v4642_v34, %v252_v54  ;;  %v757_v7 = vand.u32 4294901760, %v4681_v62  ;;  %v760_v8 = vand.u32 4294901760, %v4683_v63  ;;  %v4732_v47 = vld [vmem:[#allocation7 + $0x28] sm:$0xff]  ;;  %v4751_v53 = vld [vmem:[#allocation7 + $0xb8] sm:$0xff] }
  0x69   :  { %v201_v58 = vand.u32 4294901760, %v200_v52  ;;  %v3775_v61 = vpack.c.bf16 %v248_v57, %v236_v56  ;;  %v709_v12 = vand.u32 4294901760, %v4685_v2  ;;  %v712_v13 = vand.u32 4294901760, %v4687_v3  ;;  %v4749_v52 = vld [vmem:[#allocation7 + $0xb0] sm:$0xff] }
  0x6a   :  { %v254_v1 = vand.u32 4294901760, %v253_v60  ;;  %v3781_v14 = vpack.c.bf16 %v4621_v21, %v4617_v19  ;;  %v763_v15 = vand.u32 4294901760, %v4690_v4  ;;  %v4711_v25 = vpack.c.bf16 %v760_v8, %v757_v7 }
  0x6b   :  { %202 = vmatmul.mubr.f32.vlgmr.msra.gmra.mrb[0].mxu0 %v201_v58  ;;  %v5668_v26 = vand.u32 4294901760, %v4696_v9  ;;  %v5667_v27 = vand.u32 4294901760, %v4698_v10  ;;  %v5666_v37 = vand.u32 4294901760, %v4700_v11  ;;  %v4720_v38 = vpack.c.bf16 %v712_v13, %v709_v12  ;;  %v4759_v58 = vld [vmem:[#allocation7 + $0x30] sm:$0xff] }
  0x6c   :  { %3774 = vmatpush1.bf16.msra.mxu0 %v3773_v55  ;;  %312 = vmatprep.mubr.f32.mxu0 %v5669_v0  ;;  %v3777_v5 = vpack.c.bf16 %v254_v1, %v242_v59  ;;  %v3783_v45 = vpack.c.bf16 %v4628_v24, %v4625_v23  ;;  %v769_v50 = vand.u32 4294901760, %v4722_v39  ;;  %v772_v51 = vand.u32 4294901760, %v4724_v40  ;;  %v4761_v59 = vld [vmem:[#allocation7 + $0x38] sm:$0xff] }
  0x6d   :  { %3776 = vmatprep.subr.bf16.mxu0 %v3775_v61  ;;  %3812 = vmatprep.subr.bf16.mxu1 %v4711_v25  ;;  %v4738_v48 = vpack.c.bf16 %v5668_v26, %v763_v15  ;;  %v4744_v49 = vpack.c.bf16 %v5666_v37, %v5667_v27  ;;  %v3785_v55 = vpack.c.bf16 %v4642_v34, %v4640_v33  ;;  %v721_v56 = vand.u32 4294901760, %v4730_v46 }
  0x6e   :  { %3814 = vmatpush3.bf16.msra.mxu1 %v4720_v38  ;;  %v724_v57 = vand.u32 4294901760, %v4732_v47  ;;  %v4763_v60 = vpack.c.bf16 %v772_v51, %v769_v50  ;;  %v775_v61 = vand.u32 4294901760, %v4749_v52  ;;  %v778_v1 = vand.u32 4294901760, %v4751_v53 }
  0x6f   :  { %3816 = vmatprep.subr.bf16.mxu1 %v4738_v48  ;;  %v3797_v27 = vpack.c.bf16 %v228_v35, %v216_v31  ;;  %v3799_v26 = vpack.c.bf16 %v246_v42, %v234_v41  ;;  %v3801_v17 = vpack.c.bf16 %v252_v54, %v240_v43  ;;  %v4809_v18 = vsub.f32 %v4681_v62, %v757_v7  ;;  %v693_v41 = vld [vmem:[#allocation7 + $0xc0] sm:$0xff]  ;;  %v694_v42 = vld [vmem:[#allocation7 + $0xc8] sm:$0xff] }
  0x70   :  { %3778 = vmatpush1.bf16.msra.mxu0 %v3777_v5  ;;  %v4769_v5 = vpack.c.bf16 %v724_v57, %v721_v56  ;;  %v4814_v19 = vsub.f32 %v4683_v63, %v760_v8  ;;  %v4827_v21 = vsub.f32 %v4687_v3, %v712_v13  ;;  %v5708_v24 = vand.u32 4294901760, %v4696_v9  ;;  %v678_v7 = vld [vmem:[#allocation7 + $0x48] sm:$0xff]  ;;  %v4880_v8 = vld [vmem:[#allocation7 + $0xd0] sm:$0xff] }
  0x71   :  { %3780 = vmatprep.subr.bf16.mxu0 %v3779_v6  ;;  %v727_v6 = vand.u32 4294901760, %v4759_v58  ;;  %v5710_v33 = vand.u32 4294901760, %v4700_v11  ;;  %v4870_v54 = vsub.f32 %v4732_v47, %v724_v57  ;;  %v781_v62 = vand.u32 4294901760, %v693_v41  ;;  %v679_v47 = vld [vmem:[#allocation7 + $0x50] sm:$0xff] }
  0x72   :  { %3818 = vmatpush3.bf16.msra.mxu1 %v4744_v49  ;;  %v3875_v23 = vpack.c.bf16 %v4814_v19, %v4809_v18  ;;  %v784_v3 = vand.u32 4294901760, %v694_v42 }
  0x73   :  { %314 = vmatmul.mubr.f32.vlgmr.msra.gmra.mrb[0].mxu0 %v4632_v28  ;;  %3820 = vmatprep.subr.bf16.mxu1 %v4763_v60  ;;  %v4853_v34 = vsub.f32 %v4700_v11, %v5710_v33  ;;  %v4892_v13 = vsub.f32 %v693_v41, %v781_v62  ;;  %v681_v33 = vld [vmem:[#allocation7 + $0x60] sm:$0xff] }
  0x74   :  { %3782 = vmatpush1.bf16.msra.mxu0 %v3781_v14  ;;  %400 = vmatprep.mubr.f32.mxu0 %v5669_v0  ;;  %v730_v14 = vand.u32 4294901760, %v4761_v59  ;;  %v745_v41 = vand.u32 4294901760, %v681_v33 }
  0x75   :  { %3784 = vmatprep.subr.bf16.mxu0 %v3783_v45  ;;  %v4773_v45 = vpack.c.bf16 %v778_v1, %v775_v61 }
  0x76   :  { %3822 = vmatpush3.bf16.msra.mxu1 %v4769_v5  ;;  %v4777_v37 = vpack.c.bf16 %v730_v14, %v727_v6  ;;  %v4888_v11 = vsub.f32 %v4761_v59, %v730_v14 }
  0x77   :  { %3824 = vmatprep.subr.bf16.mxu1 %v4773_v45 }
  0x78   :  { %3786 = vmatpush1.bf16.msra.mxu0 %v3785_v55  ;;  %5707 = vst [vmem:[#allocation16_spill] sm:$0xff] %v4777_v37  ;;  %v3795_v55 = vpack.c.bf16 %v222_v30, %v210_v29  ;;  %v4840_v29 = vsub.f32 %v4696_v9, %v5708_v24  ;;  %v4882_v9 = vld [vmem:[#allocation7 + $0xd8] sm:$0xff]  ;;  %v698_v24 = vld [vmem:[#allocation7 + $0xe8] sm:$0xff] }
  0x79   :  { %3788 = vmatprep.subr.bf16.mxu0 %v4611_v16 }
  0x7a   :  { %3826 = vmatpush3.bf16.msra.mxu1 %v4777_v37 }
  0x7b   :  { %403 = vmatmul.mubr.f32.vlgmr.msra.gmra.mrb[0].mxu0 %v4646_v36  ;;  %v4858_v36 = vsub.f32 %v4722_v39, %v769_v50  ;;  %v4896_v39 = vsub.f32 %v694_v42, %v784_v3  ;;  %v680_v50 = vld [vmem:[#allocation7 + $0x58] sm:$0xff] }
  0x7c   :  { %3790 = vmatpush1.bf16.msra.mxu0 %v4619_v20  ;;  %481 = vmatprep.mubr.f32.mxu0 %v5669_v0  ;;  %v742_v57 = vand.u32 4294901760, %v680_v50 }
  0x7d   :  { %3792 = vmatprep.subr.bf16.mxu0 %v4623_v22 }
  0x7e   :  { %v4918_v14 = vsub.f32 %v680_v50, %v742_v57 }
  0x80   :  { %3794 = vmatpush1.bf16.msra.mxu0 %v4638_v32 }
  0x81   :  { %3796 = vmatprep.subr.bf16.mxu0 %v3795_v55 }
  0x83   :  { %485 = vmatmul.mubr.f32.vlgmr.msra.gmra.mrb[0].mxu0 %v199_v44  ;;  %v4867_v44 = vsub.f32 %v4730_v46, %v721_v56  ;;  %v790_v46 = vand.u32 4294901760, %v4882_v9  ;;  %v739_v56 = vand.u32 4294901760, %v679_v47 }
  0x84   :  { %3798 = vmatpush1.bf16.msra.mxu0 %v3797_v27  ;;  %579 = vmatprep.mubr.f32.mxu0 %v5669_v0 }
  0x85   :  { %3800 = vmatprep.subr.bf16.mxu0 %v3799_v26  ;;  %v736_v26 = vand.u32 4294901760, %v678_v7 }
  0x88   :  { %3802 = vmatpush1.bf16.msra.mxu0 %v3801_v17 }
  0x89   :  { %3804 = vmatprep.subr.bf16.mxu0 %v4611_v16  ;;  %v4822_v16 = vsub.f32 %v4685_v2, %v709_v12  ;;  %v4875_v2 = vsub.f32 %v4749_v52, %v775_v61  ;;  %v3885_v12 = vpack.c.bf16 %v4870_v54, %v4867_v44  ;;  %v4912_v61 = vsub.f32 %v4882_v9, %v790_v46 }
  0x8b   :  { %581 = vmatmul.mubr.f32.vlgmr.msra.gmra.mrb[0].mxu0 %v4632_v28  ;;  %v3877_v30 = vpack.c.bf16 %v4827_v21, %v4822_v16 }
  0x8c   :  { %3806 = vmatpush1.bf16.msra.mxu0 %v4619_v20  ;;  %659 = vmatprep.mubr.f32.mxu0 %v5669_v0  ;;  %v4835_v20 = vsub.f32 %v4690_v4, %v763_v15  ;;  %v677_v4 = vld [vmem:[#allocation7 + $0x40] sm:$0xff] }
  0x8d   :  { %3808 = vmatprep.subr.bf16.mxu0 %v4623_v22  ;;  %v5709_v22 = vand.u32 4294901760, %v4698_v10  ;;  %v733_v15 = vand.u32 4294901760, %v677_v4 }
  0x8e   :  { %v3879_v35 = vpack.c.bf16 %v4840_v29, %v4835_v20 }
  0x8f   :  { %v4848_v31 = vsub.f32 %v4698_v10, %v5709_v22  ;;  %v4885_v10 = vsub.f32 %v4759_v58, %v727_v6  ;;  %v4902_v52 = vsub.f32 %v677_v4, %v733_v15  ;;  %v3891_v58 = vpack.c.bf16 %v4896_v39, %v4892_v13 }
  0x90   :  { %3810 = vmatpush1.bf16.msra.mxu0 %v4638_v32  ;;  %v4861_v32 = vsub.f32 %v4724_v40, %v772_v51  ;;  %v787_v40 = vand.u32 4294901760, %v4880_v8  ;;  %v4916_v6 = vsub.f32 %v679_v47, %v739_v56  ;;  %v796_v22 = vand.u32 4294901760, %v698_v24 }
  0x91   :  { %3876 = vmatprep.subr.bf16.mxu0 %v3875_v23  ;;  %v3881_v43 = vpack.c.bf16 %v4853_v34, %v4848_v31  ;;  %v3889_v51 = vpack.c.bf16 %v4888_v11, %v4885_v10  ;;  %v697_v23 = vld [vmem:[#allocation7 + $0xe0] sm:$0xff] }
  0x92   :  { %v3883_v63 = vpack.c.bf16 %v4861_v32, %v4858_v36  ;;  %v4909_v59 = vsub.f32 %v4880_v8, %v787_v40  ;;  %v3897_v17 = vpack.c.bf16 %v4918_v14, %v4916_v6  ;;  %v1025_v4 = vsub.f32 %v698_v24, %v796_v22 }
  0x93   :  { %661 = vmatmul.mubr.f32.vlgmr.msra.gmra.mrb[0].mxu0 %v4632_v28  ;;  %v4878_v28 = vsub.f32 %v4751_v53, %v778_v1  ;;  %v4904_v53 = vsub.f32 %v678_v7, %v736_v26  ;;  %v4926_v7 = vpack.c.bf16 %v736_v26, %v733_v15  ;;  %v906_v8 = vsub.f32 %v681_v33, %v745_v41 }
  0x94   :  { %3878 = vmatpush3.bf16.msra.mxu0 %v3877_v30  ;;  %v3895_v55 = vpack.c.bf16 %v4912_v61, %v4909_v59  ;;  %v793_v30 = vand.u32 4294901760, %v697_v23 }
  0x95   :  { %3880 = vmatprep.subr.bf16.mxu0 %v3879_v35  ;;  %v3887_v27 = vpack.c.bf16 %v4878_v28, %v4875_v2  ;;  %v3893_v1 = vpack.c.bf16 %v4904_v53, %v4902_v52  ;;  %v682_v35 = vld [vmem:[#allocation7 + $0x68] sm:$0xff]  ;;  %5712 = vst [vmem:[#allocation18_spill] sm:$0xff] %v4926_v7 }
  0x96   :  { %v748_v42 = vand.u32 4294901760, %v682_v35 }
  0x98   :  { %3882 = vmatpush3.bf16.msra.mxu0 %v3881_v43  ;;  %v4924_v43 = vpack.c.bf16 %v784_v3, %v781_v62  ;;  %v913_v9 = vsub.f32 %v682_v35, %v748_v42 }
  0x99   :  { %3884 = vmatprep.subr.bf16.mxu0 %v3883_v63  ;;  %v1018_v63 = vsub.f32 %v697_v23, %v793_v30  ;;  %v4932_v23 = vpack.c.bf16 %v742_v57, %v739_v56 }
  0x9a   :  { %5711 = vst [vmem:[#allocation17_spill] sm:$0xff] %v4924_v43  ;;  %3828 = vmatprep.subr.bf16.mxu1 %v4924_v43 }
  0x9b   :  { %v3899_v47 = vpack.c.bf16 %v1025_v4, %v1018_v63  ;;  %3830 = vmatpush3.bf16.msra.mxu1 %v4926_v7  ;;  %5714 = vst [vmem:[#allocation20_spill] sm:$0xff] %v4932_v23  ;;  %v4936_v7 = vpack.c.bf16 %v796_v22, %v793_v30 }
  0x9c   :  { %3886 = vmatpush3.bf16.msra.mxu0 %v3885_v12  ;;  %v699_v12 = vld [vmem:[#allocation7 + $0xf0] sm:$0xff] }
  0x9d   :  { %3888 = vmatprep.subr.bf16.mxu0 %v3887_v27  ;;  %v700_v27 = vld [vmem:[#allocation7 + $0xf8] sm:$0xff]  ;;  %v799_v50 = vand.u32 4294901760, %v699_v12  ;;  %5715 = vst [vmem:[#allocation21_spill] sm:$0xff] %v4936_v7 }
  0x9f   :  { %v1032_v15 = vsub.f32 %v699_v12, %v799_v50 }
  0xa0   :  { %3890 = vmatpush3.bf16.msra.mxu0 %v3889_v51  ;;  %v802_v51 = vand.u32 4294901760, %v700_v27 }
  0xa1   :  { %3892 = vmatprep.subr.bf16.mxu0 %v3891_v58  ;;  %v683_v58 = vld [vmem:[#allocation7 + $0x70] sm:$0xff] }
  0xa2   :  { %v751_v62 = vand.u32 4294901760, %v683_v58  ;;  %v1039_v26 = vsub.f32 %v700_v27, %v802_v51  ;;  %v4944_v57 = vpack.c.bf16 %v802_v51, %v799_v50 }
  0xa4   :  { %3894 = vmatpush3.bf16.msra.mxu0 %v3893_v1  ;;  %v684_v1 = vld [vmem:[#allocation7 + $0x78] sm:$0xff]  ;;  %v920_v24 = vsub.f32 %v683_v58, %v751_v62  ;;  %v3903_v35 = vpack.c.bf16 %v1039_v26, %v1032_v15  ;;  %5717 = vst [vmem:[#allocation23_spill] sm:$0xff] %v4944_v57  ;;  %v1026_v58 = vand.u32 4294901760, %v1025_v4 }
  0xa5   :  { %3896 = vmatprep.subr.bf16.mxu0 %v3895_v55  ;;  %v3901_v55 = vpack.c.bf16 %v913_v9, %v906_v8  ;;  %v754_v3 = vand.u32 4294901760, %v684_v1 }
  0xa7   :  { %v927_v33 = vsub.f32 %v684_v1, %v754_v3  ;;  %v4947_v27 = vpack.c.bf16 %v754_v3, %v751_v62  ;;  %v907_v1 = vand.u32 4294901760, %v906_v8  ;;  %v1040_v62 = vand.u32 4294901760, %v1039_v26 }
  0xa8   :  { %3898 = vmatpush3.bf16.msra.mxu0 %v3897_v17  ;;  %v4930_v17 = vpack.c.bf16 %v790_v46, %v787_v40  ;;  %v942_v40 = vand.u32 4294901760, %v4814_v19  ;;  %v4940_v46 = vpack.c.bf16 %v748_v42, %v745_v41  ;;  %v1019_v42 = vand.u32 4294901760, %v1018_v63 }
  0xa9   :  { %3900 = vmatprep.subr.bf16.mxu0 %v3899_v47  ;;  %v3905_v0 = vpack.c.bf16 %v927_v33, %v920_v24  ;;  %v935_v47 = vand.u32 4294901760, %v4809_v18  ;;  %5718 = vst [vmem:[#allocation24_spill] sm:$0xff] %v4947_v27  ;;  %v921_v3 = vand.u32 4294901760, %v920_v24 }
  0xaa   :  { %5713 = vst [vmem:[#allocation19_spill] sm:$0xff] %v4930_v17  ;;  %3832 = vmatprep.subr.bf16.mxu1 %v4930_v17  ;;  %5716 = vst [vmem:[#allocation22_spill] sm:$0xff] %v4940_v46  ;;  %v943_v30 = vsub.f32 %v4814_v19, %v942_v40  ;;  %v4952_v50 = vpack.c.bf16 %v1026_v58, %v1019_v42  ;;  %v928_v19 = vand.u32 4294901760, %v927_v33 }
  0xab   :  { %3834 = vmatpush3.bf16.msra.mxu1 %v4932_v23  ;;  %v3939_v56 = vpack.c.bf16 %v942_v40, %v935_v47  ;;  %v936_v12 = vsub.f32 %v4809_v18, %v935_v47  ;;  %v1033_v18 = vand.u32 4294901760, %v1032_v15  ;;  %v1027_v40 = vsub.f32 %v1025_v4, %v1026_v58 }
  0xac   :  { %3902 = vmatpush3.bf16.msra.mxu0 %v3901_v55  ;;  %3836 = vmatprep.subr.bf16.mxu1 %v4936_v7  ;;  %v914_v55 = vand.u32 4294901760, %v913_v9  ;;  %v922_v7 = vsub.f32 %v920_v24, %v921_v3  ;;  %v929_v23 = vsub.f32 %v927_v33, %v928_v19 }
  0xad   :  { %3904 = vmatprep.subr.bf16.mxu0 %v3903_v35  ;;  %v937_v22 = vand.u32 4294901760, %v936_v12  ;;  %v1020_v35 = vsub.f32 %v1018_v63, %v1019_v42  ;;  %v4956_v47 = vpack.c.bf16 %v1040_v62, %v1033_v18  ;;  %v4958_v12 = vpack.c.bf16 %v928_v19, %v921_v3 }
  0xae   :  { %v4954_v51 = vpack.c.bf16 %v914_v55, %v907_v1  ;;  %v923_v42 = vand.u32 4294901760, %v922_v7  ;;  %v930_v4 = vand.u32 4294901760, %v929_v23  ;;  %v830_v7 = vand.u32 4294901760, %v4827_v21 }
  0xaf   :  { %3838 = vmatpush3.bf16.msra.mxu1 %v4940_v46  ;;  %v949_v3 = vand.u32 4294901760, %v4835_v20 }
  0xb0   :  { %3906 = vmatpush3.bf16.msra.mxu0 %v3905_v0  ;;  %3840 = vmatprep.subr.bf16.mxu1 %v4944_v57  ;;  %v944_v0 = vand.u32 4294901760, %v943_v30  ;;  %v1021_v30 = vand.u32 4294901760, %v1020_v35  ;;  %v1041_v57 = vsub.f32 %v1039_v26, %v1040_v62  ;;  %v4966_v58 = vpack.c.bf16 %v930_v4, %v923_v42  ;;  %v108_v26 = vld [vmem:[%s5658_s2] sm:$0x3] }
  0xb1   :  { %3940 = vmatprep.subr.bf16.mxu0 %v3939_v56  ;;  %v908_v56 = vsub.f32 %v906_v8, %v907_v1  ;;  %v956_v35 = vand.u32 4294901760, %v4840_v29  ;;  %v950_v42 = vsub.f32 %v4835_v20, %v949_v3 }
  0xb2   :  { %v3843_v41 = vpack.c.bf16 %v944_v0, %v937_v22  ;;  %v915_v22 = vsub.f32 %v913_v9, %v914_v55  ;;  %v1028_v0 = vand.u32 4294901760, %v1027_v40  ;;  %v1042_v37 = vand.u32 4294901760, %v1041_v57 }
  0xb3   :  { %3842 = vmatpush3.bf16.msra.mxu1 %v4947_v27  ;;  %v1034_v27 = vsub.f32 %v1032_v15, %v1033_v18  ;;  %v5689_v9 = vlaneseq  ;;  %v831_v55 = vsub.f32 %v4827_v21, %v830_v7  ;;  %v837_v40 = vand.u32 4294901760, %v4848_v31 }
  0xb4   :  { %3844 = vmatprep.subr.bf16.mxu1 %v3843_v41  ;;  %v909_v41 = vand.u32 4294901760, %v908_v56  ;;  %v916_v46 = vand.u32 4294901760, %v915_v22  ;;  %v4960_v17 = vpack.c.bf16 %v1028_v0, %v1021_v30  ;;  %v844_v56 = vand.u32 4294901760, %v4853_v34 }
  0xb5   :  { %v1035_v43 = vand.u32 4294901760, %v1034_v27  ;;  %v111_v1 = vshrl.u32 %v5689_v9, 7  ;;  %v832_v0 = vand.u32 4294901760, %v831_v55  ;;  %v970_v21 = vand.u32 4294901760, %v4861_v32 }
  0xb6   :  { %v4962_v63 = vpack.c.bf16 %v916_v46, %v909_v41  ;;  %v823_v46 = vand.u32 4294901760, %v4822_v16  ;;  %v845_v20 = vsub.f32 %v4853_v34, %v844_v56  ;;  %v991_v9 = vand.u32 4294901760, %v4892_v13 }
  0xb7   :  { %v4964_v8 = vpack.c.bf16 %v1042_v37, %v1035_v43  ;;  %v112_v15 = vsub.s32 0, %v111_v1  ;;  %v116_v24 = vsub.s32 1, %v111_v1 }
  0xb8   :  { %v824_v57 = vsub.f32 %v4822_v16, %v823_v46  ;;  %v963_v16 = vand.u32 4294901760, %v4858_v36  ;;  %v3941_v1 = vpack.c.bf16 %v830_v7, %v823_v46 }
  0xb9   :  { %v113_v33 = vrot.slane %v108_v26, %v112_v15  ;;  %v117_v27 = vrot.slane %v108_v26, %v116_v24  ;;  %v957_v15 = vsub.f32 %v4840_v29, %v956_v35  ;;  %v3943_v24 = vpack.c.bf16 %v956_v35, %v949_v3 }
  0xba   :  { %v825_v22 = vand.u32 4294901760, %v824_v57  ;;  %v3947_v7 = vpack.c.bf16 %v970_v21, %v963_v16  ;;  %v951_v57 = vand.u32 4294901760, %v950_v42  ;;  %v984_v35 = vand.u32 4294901760, %v4878_v28 }
  0xbb   :  { %v958_v55 = vand.u32 4294901760, %v957_v15 }
  0xbc   :  { %v3845_v29 = vpack.c.bf16 %v832_v0, %v825_v22 }
 0x166   :  { %v662_v23 = vpop.f32.mrb[0].mxu0 }
 0x167   :  { %v4291_v37 = vadd.f32 %v662_v23, %v113_v33  ;;  %v664_v43 = vpop.f32.mrb[1].mxu0  ;;  %v3945_v33 = vpack.c.bf16 %v844_v56, %v837_v40  ;;  %v865_v56 = vand.u32 4294901760, %v4885_v10 }
 0x168   :  { %v4292_v18 = vadd.f32 %v664_v43, %v117_v27  ;;  %v838_v27 = vsub.f32 %v4848_v31, %v837_v40  ;;  %v858_v43 = vand.u32 4294901760, %v4870_v54  ;;  %v846_v40 = vand.u32 4294901760, %v845_v20 }
 0x169   :  { %v667_v62 = vmax.f32 %v4291_v37, 0.0  ;;  %v851_v37 = vand.u32 4294901760, %v4867_v44 }
 0x16a   :  { %v668_v19 = vmax.f32 %v4292_v18, 0.0  ;;  %v964_v18 = vsub.f32 %v4858_v36, %v963_v16  ;;  %v839_v3 = vand.u32 4294901760, %v838_v27  ;;  %v872_v36 = vand.u32 4294901760, %v4888_v11 }
 0x16b   :  { %v4980_v30 = vand.u32 4294901760, %v667_v62  ;;  %v859_v0 = vsub.f32 %v4870_v54, %v858_v43  ;;  %v866_v54 = vsub.f32 %v4885_v10, %v865_v56  ;;  %v879_v10 = vand.u32 4294901760, %v4902_v52 }
 0x16c   :  { %v4982_v41 = vand.u32 4294901760, %v668_v19  ;;  %v965_v15 = vand.u32 4294901760, %v964_v18 }
 0x16d   :  { %v4988_v4 = vsub.f32 %v667_v62, %v4980_v30  ;;  %v971_v62 = vsub.f32 %v4861_v32, %v970_v21  ;;  %v852_v32 = vsub.f32 %v4867_v44, %v851_v37  ;;  %v985_v21 = vsub.f32 %v4878_v28, %v984_v35 }
 0x16e   :  { %v4992_v26 = vsub.f32 %v668_v19, %v4982_v41  ;;  %v977_v19 = vand.u32 4294901760, %v4875_v2  ;;  %v3849_v44 = vpack.c.bf16 %v846_v40, %v839_v3  ;;  %v1012_v3 = vand.u32 4294901760, %v4912_v61 }
 0x16f   :  { %v5690_v23 = vand.u32 4294901760, %v4988_v4  ;;  %v972_v27 = vand.u32 4294901760, %v971_v62  ;;  %v853_v28 = vand.u32 4294901760, %v852_v32  ;;  %v893_v32 = vand.u32 4294901760, %v4916_v6 }
 0x170   :  { %1182 = vmatprep.mubr.f32.mxu0 %v4992_v26  ;;  %v806_v46 = vand.u32 4294901760, %v4992_v26  ;;  %v978_v16 = vsub.f32 %v4875_v2, %v977_v19  ;;  %v3951_v20 = vpack.c.bf16 %v984_v35, %v977_v19  ;;  %v873_v2 = vsub.f32 %v4888_v11, %v872_v36 }
 0x171   :  { %1185 = vmatmul.mubr.f32.vlgmr.msra.gmra.mrb[2].mxu0 %v4988_v4  ;;  %v813_v31 = vsub.f32 %v4988_v4, %v5690_v23  ;;  %v998_v23 = vand.u32 4294901760, %v4896_v39  ;;  %v886_v11 = vand.u32 4294901760, %v4904_v53 }
 0x172   :  { %3942 = vmatpush3.bf16.msra.mxu0 %v3941_v1  ;;  %1459 = vmatprep.mubr.f32.mxu0 %v4982_v41  ;;  %v807_v34 = vsub.f32 %v4992_v26, %v806_v46  ;;  %v3847_v1 = vpack.c.bf16 %v958_v55, %v951_v57  ;;  %v860_v57 = vand.u32 4294901760, %v859_v0  ;;  %v874_v62 = vand.u32 4294901760, %v873_v2 }
 0x173   :  { %3944 = vmatprep.subr.bf16.mxu0 %v3943_v24  ;;  %v814_v42 = vand.u32 4294901760, %v813_v31  ;;  %v3949_v24 = vpack.c.bf16 %v858_v43, %v851_v37  ;;  %v986_v31 = vand.u32 4294901760, %v985_v21  ;;  %v3851_v37 = vpack.c.bf16 %v972_v27, %v965_v15 }
 0x174   :  { %v808_v22 = vand.u32 4294901760, %v807_v34  ;;  %v992_v43 = vsub.f32 %v4892_v13, %v991_v9  ;;  %v999_v55 = vsub.f32 %v4896_v39, %v998_v23  ;;  %v3955_v18 = vpack.c.bf16 %v998_v23, %v991_v9 }
 0x175   :  { %v1005_v34 = vand.u32 4294901760, %v4909_v59  ;;  %v3853_v19 = vpack.c.bf16 %v860_v57, %v853_v28  ;;  %v880_v13 = vsub.f32 %v4902_v52, %v879_v10  ;;  %v887_v39 = vsub.f32 %v4904_v53, %v886_v11  ;;  %v1577_v57 = vld [vmem:[#allocation8 + $0x30] sm:$0xff] }
 0x176   :  { %3946 = vmatpush3.bf16.msra.mxu0 %v3945_v33  ;;  %809 = vmatprep.mubr.f32.mxu1 %v808_v22  ;;  %v979_v33 = vand.u32 4294901760, %v978_v16  ;;  %v993_v9 = vand.u32 4294901760, %v992_v43  ;;  %v1000_v23 = vand.u32 4294901760, %v999_v55  ;;  %v900_v22 = vand.u32 4294901760, %v4918_v14 }
 0x177   :  { %815 = vmatmul.mubr.f32.vlgmr.msra.gmra.mrb[0].mxu1 %v814_v42  ;;  %3948 = vmatprep.subr.bf16.mxu0 %v3947_v7  ;;  %v3953_v7 = vpack.c.bf16 %v872_v36, %v865_v56  ;;  %v1006_v40 = vsub.f32 %v4909_v59, %v1005_v34  ;;  %v1013_v56 = vsub.f32 %v4912_v61, %v1012_v3  ;;  %v881_v52 = vand.u32 4294901760, %v880_v13  ;;  %v1580_v13 = vld [vmem:[#allocation8 + $0x48] sm:$0xff] }
 0x178   :  { %3846 = vmatpush3.bf16.msra.mxu1 %v3845_v29  ;;  %1045 = vmatprep.mubr.f32.mxu1 %v4982_v41  ;;  %v867_v29 = vand.u32 4294901760, %v866_v54  ;;  %v3855_v35 = vpack.c.bf16 %v986_v31, %v979_v33  ;;  %v3957_v36 = vpack.c.bf16 %v886_v11, %v879_v10  ;;  %v3959_v16 = vpack.c.bf16 %v1012_v3, %v1005_v34  ;;  %v1578_v33 = vld [vmem:[#allocation8 + $0x38] sm:$0xff] }
 0x179   :  { %3848 = vmatprep.subr.bf16.mxu1 %v3847_v1  ;;  %v888_v21 = vand.u32 4294901760, %v887_v39  ;;  %v894_v53 = vsub.f32 %v4916_v6, %v893_v32  ;;  %v901_v42 = vsub.f32 %v4918_v14, %v900_v22  ;;  %v3859_v59 = vpack.c.bf16 %v1000_v23, %v993_v9  ;;  %v5719_v14 = vld [vmem:[#allocation16_spill] sm:$0xff] }
 0x17a   :  { %3950 = vmatpush3.bf16.msra.mxu0 %v3949_v24  ;;  %v3857_v0 = vpack.c.bf16 %v874_v62, %v867_v29  ;;  %v1007_v1 = vand.u32 4294901760, %v1006_v40  ;;  %v1014_v61 = vand.u32 4294901760, %v1013_v56  ;;  %v3961_v15 = vpack.c.bf16 %v900_v22, %v893_v32  ;;  %v1581_v40 = vld [vmem:[#allocation8 + $0x50] sm:$0xff]  ;;  %v1582_v56 = vld [vmem:[#allocation8 + $0x58] sm:$0xff] }
 0x17b   :  { %3952 = vmatprep.subr.bf16.mxu0 %v3951_v20  ;;  %v3861_v27 = vpack.c.bf16 %v888_v21, %v881_v52  ;;  %v895_v24 = vand.u32 4294901760, %v894_v53  ;;  %v902_v20 = vand.u32 4294901760, %v901_v42  ;;  %v5728_v26 = vand.u32 4294901760, %v4988_v4  ;;  %v1575_v4 = vld [vmem:[#allocation8 + $0x20] sm:$0xff]  ;;  %v1585_v42 = vld [vmem:[#allocation8 + $0x70] sm:$0xff] }
 0x17c   :  { %3850 = vmatpush3.bf16.msra.mxu1 %v3849_v44  ;;  %v3863_v44 = vpack.c.bf16 %v1014_v61, %v1007_v1  ;;  %v1607_v2 = vand.u32 4294901760, %v1575_v4  ;;  %v1613_v11 = vand.u32 4294901760, %v1577_v57  ;;  %v1616_v29 = vand.u32 4294901760, %v1578_v33 }
 0x17d   :  { %3852 = vmatprep.subr.bf16.mxu1 %v3851_v37  ;;  %v3865_v6 = vpack.c.bf16 %v902_v20, %v895_v24  ;;  %v1622_v9 = vand.u32 4294901760, %v1580_v13  ;;  %v1628_v32 = vand.u32 4294901760, %v1582_v56  ;;  %v1637_v1 = vand.u32 4294901760, %v1585_v42 }
 0x17e   :  { %3954 = vmatpush3.bf16.msra.mxu0 %v3953_v7  ;;  %v5098_v7 = vsub.f32 %v1575_v4, %v1607_v2  ;;  %v5106_v62 = vsub.f32 %v1577_v57, %v1613_v11  ;;  %v5108_v34 = vsub.f32 %v1578_v33, %v1616_v29 }
 0x17f   :  { %3956 = vmatprep.subr.bf16.mxu0 %v3955_v18  ;;  %v5136_v20 = vsub.f32 %v1580_v13, %v1622_v9 }
 0x180   :  { %3854 = vmatpush3.bf16.msra.mxu1 %v3853_v19  ;;  %v5115_v19 = vpack.c.bf16 %v1616_v29, %v1613_v11  ;;  %v5702_v4 = vand.u32 4294901760, %v5098_v7  ;;  %v5700_v11 = vand.u32 4294901760, %v5106_v62  ;;  %v5699_v29 = vand.u32 4294901760, %v5108_v34 }
 0x181   :  { %3856 = vmatprep.subr.bf16.mxu1 %v3855_v35  ;;  %v1579_v35 = vld [vmem:[#allocation8 + $0x40] sm:$0xff] }
 0x182   :  { %3958 = vmatpush3.bf16.msra.mxu0 %v3957_v36  ;;  %v1619_v39 = vand.u32 4294901760, %v1579_v35  ;;  %v1625_v36 = vand.u32 4294901760, %v1581_v40  ;;  %v1731_v13 = vsub.f32 %v5106_v62, %v5700_v11 }
 0x183   :  { %3960 = vmatprep.subr.bf16.mxu0 %v3959_v16  ;;  %v1584_v16 = vld [vmem:[#allocation8 + $0x68] sm:$0xff] }
 0x184   :  { %3858 = vmatpush3.bf16.msra.mxu1 %v3857_v0  ;;  %v5120_v23 = vpack.c.bf16 %v1622_v9, %v1619_v39  ;;  %v5124_v22 = vpack.c.bf16 %v1628_v32, %v1625_v36  ;;  %v1583_v0 = vld [vmem:[#allocation8 + $0x60] sm:$0xff]  ;;  %v1634_v21 = vand.u32 4294901760, %v1584_v16  ;;  %v5134_v24 = vsub.f32 %v1579_v35, %v1619_v39 }
 0x185   :  { %3860 = vmatprep.subr.bf16.mxu1 %v3859_v59  ;;  %v1631_v52 = vand.u32 4294901760, %v1583_v0  ;;  %v1586_v59 = vld [vmem:[#allocation8 + $0x78] sm:$0xff]  ;;  %v1738_v39 = vsub.f32 %v5108_v34, %v5699_v29 }
 0x186   :  { %3962 = vmatpush3.bf16.msra.mxu0 %v3961_v15  ;;  %v1640_v61 = vand.u32 4294901760, %v1586_v59 }
 0x187   :  { %3964 = vmatprep.subr.bf16.mxu0 %v4952_v50  ;;  %v5721_v50 = vld [vmem:[#allocation18_spill] sm:$0xff]  ;;  %v5128_v53 = vpack.c.bf16 %v1634_v21, %v1631_v52 }
 0x188   :  { %3862 = vmatpush3.bf16.msra.mxu1 %v3861_v27 }
 0x189   :  { %3864 = vmatprep.subr.bf16.mxu1 %v3863_v44  ;;  %v5138_v44 = vsub.f32 %v1581_v40, %v1625_v36  ;;  %v1739_v36 = vand.u32 4294901760, %v1738_v39 }
 0x18a   :  { %3966 = vmatpush3.bf16.msra.mxu0 %v4954_v51  ;;  %v5722_v51 = vld [vmem:[#allocation19_spill] sm:$0xff] }
 0x18b   :  { %3968 = vmatprep.subr.bf16.mxu0 %v4956_v47  ;;  %v5723_v47 = vld [vmem:[#allocation20_spill] sm:$0xff] }
 0x18c   :  { %3866 = vmatpush3.bf16.msra.mxu1 %v3865_v6  ;;  %v5140_v6 = vsub.f32 %v1582_v56, %v1628_v32  ;;  %v1732_v56 = vand.u32 4294901760, %v1731_v13  ;;  %v5698_v32 = vand.u32 4294901760, %v5134_v24 }
 0x18d   :  { %3868 = vmatprep.subr.bf16.mxu1 %v4960_v17  ;;  %v5720_v17 = vld [vmem:[#allocation17_spill] sm:$0xff] }
 0x18e   :  { %3970 = vmatpush3.bf16.msra.mxu0 %v4958_v12  ;;  %v5724_v12 = vld [vmem:[#allocation21_spill] sm:$0xff] }
 0x190   :  { %3870 = vmatpush3.bf16.msra.mxu1 %v4962_v63  ;;  %v5725_v63 = vld [vmem:[#allocation22_spill] sm:$0xff] }
 0x191   :  { %1461 = vmatmul.mubr.f32.vlgmr.msra.gmra.mrb[4].mxu0 %v4980_v30  ;;  %3872 = vmatprep.subr.bf16.mxu1 %v4964_v8  ;;  %v5726_v8 = vld [vmem:[#allocation23_spill] sm:$0xff] }
 0x194   :  { %3874 = vmatpush3.bf16.msra.mxu1 %v4966_v58  ;;  %v5727_v58 = vld [vmem:[#allocation24_spill] sm:$0xff] }
 0x195   :  { %3908 = vmatprep.subr.bf16.mxu1 %v4711_v25 }
 0x197   :  { %1047 = vmatmul.mubr.f32.vlgmr.msra.gmra.mrb[2].mxu1 %v4980_v30 }
 0x198   :  { %3910 = vmatpush3.bf16.msra.mxu1 %v4720_v38  ;;  %1289 = vmatprep.mubr.f32.mxu1 %v806_v46  ;;  %v1576_v46 = vld [vmem:[#allocation8 + $0x28] sm:$0xff] }
 0x199   :  { %3912 = vmatprep.subr.bf16.mxu1 %v4738_v48  ;;  %v1610_v28 = vand.u32 4294901760, %v1576_v46 }
 0x19b   :  { %v5103_v10 = vsub.f32 %v1576_v46, %v1610_v28  ;;  %v5111_v3 = vpack.c.bf16 %v1610_v28, %v1607_v2  ;;  %v1717_v2 = vsub.f32 %v5098_v7, %v5702_v4 }
 0x19c   :  { %3914 = vmatpush3.bf16.msra.mxu1 %v4744_v49 }
 0x19d   :  { %3916 = vmatprep.subr.bf16.mxu1 %v4763_v60  ;;  %v5701_v46 = vand.u32 4294901760, %v5103_v10  ;;  %v1718_v57 = vand.u32 4294901760, %v1717_v2 }
 0x19f   :  { %v1724_v28 = vsub.f32 %v5103_v10, %v5701_v46 }
 0x1a0   :  { %3918 = vmatpush3.bf16.msra.mxu1 %v4769_v5 }
 0x1a1   :  { %3920 = vmatprep.subr.bf16.mxu1 %v4773_v45  ;;  %v1725_v33 = vand.u32 4294901760, %v1724_v28 }
 0x1a3   :  { %v5186_v35 = vpack.c.bf16 %v1725_v33, %v1718_v57 }
 0x1a4   :  { %3922 = vmatpush3.bf16.msra.mxu1 %v5719_v14 }
 0x1a5   :  { %3924 = vmatprep.subr.bf16.mxu1 %v5720_v17 }
 0x1a8   :  { %3926 = vmatpush3.bf16.msra.mxu1 %v5721_v50 }
 0x1a9   :  { %3928 = vmatprep.subr.bf16.mxu1 %v5722_v51 }
 0x1ac   :  { %3930 = vmatpush3.bf16.msra.mxu1 %v5723_v47 }
 0x1ad   :  { %3932 = vmatprep.subr.bf16.mxu1 %v5724_v12 }
 0x1b0   :  { %3934 = vmatpush3.bf16.msra.mxu1 %v5725_v63 }
 0x1b1   :  { %3936 = vmatprep.subr.bf16.mxu1 %v5726_v8 }
 0x1b4   :  { %3938 = vmatpush3.bf16.msra.mxu1 %v5727_v58 }
 0x1b5   :  { %3972 = vmatprep.subr.bf16.mxu1 %v4711_v25  ;;  %v1571_v25 = vld [vmem:[#allocation8] sm:$0xff] }
 0x1b7   :  { %1293 = vmatmul.mubr.f32.vlgmr.msra.gmra.mrb[4].mxu1 %v5728_v26 }
 0x1b8   :  { %3974 = vmatpush3.bf16.msra.mxu1 %v4720_v38  ;;  %1563 = vmatprep.mubr.f32.mxu1 %v4982_v41  ;;  %v1572_v38 = vld [vmem:[#allocation8 + $0x8] sm:$0xff] }
 0x1b9   :  { %3976 = vmatprep.subr.bf16.mxu1 %v4738_v48  ;;  %v1573_v48 = vld [vmem:[#allocation8 + $0x10] sm:$0xff] }
 0x1ba   :  { %v1601_v41 = vand.u32 4294901760, %v1573_v48 }
 0x1bc   :  { %3978 = vmatpush3.bf16.msra.mxu1 %v4744_v49  ;;  %v4488_v49 = vmov 0.0|0.0   ;;  %v5094_v43 = vsub.f32 %v1573_v48, %v1601_v41 }
 0x1bd   :  { %3980 = vmatprep.subr.bf16.mxu1 %v4763_v60  ;;  %4003 = vmatprep.subr.bf16.mxu0 %v4488_v49  ;;  %v1595_v60 = vand.u32 4294901760, %v1571_v25 }
 0x1bf   :  { %v5090_v31 = vsub.f32 %v1571_v25, %v1595_v60 }
 0x1c0   :  { %3982 = vmatpush3.bf16.msra.mxu1 %v4769_v5  ;;  %v1598_v5 = vand.u32 4294901760, %v1572_v38 }
 0x1c1   :  { %3984 = vmatprep.subr.bf16.mxu1 %v4773_v45  ;;  %v1574_v45 = vld [vmem:[#allocation8 + $0x18] sm:$0xff]  ;;  %v1688_v15 = vand.u32 4294901760, %v5090_v31 }
 0x1c2   :  { %v1604_v54 = vand.u32 4294901760, %v1574_v45  ;;  %v5092_v37 = vsub.f32 %v1572_v38, %v1598_v5 }
 0x1c4   :  { %3986 = vmatpush3.bf16.msra.mxu1 %v5719_v14  ;;  %v5096_v55 = vsub.f32 %v1574_v45, %v1604_v54  ;;  %v5101_v18 = vpack.c.bf16 %v1604_v54, %v1601_v41  ;;  %v1695_v27 = vand.u32 4294901760, %v5092_v37  ;;  %v5142_v14 = vsub.f32 %v1583_v0, %v1631_v52 }
 0x1c5   :  { %3988 = vmatprep.subr.bf16.mxu1 %v5720_v17  ;;  %v5144_v17 = vsub.f32 %v1584_v16, %v1634_v21  ;;  %v5697_v0 = vand.u32 4294901760, %v5136_v20  ;;  %v5196_v52 = vpack.c.bf16 %v1739_v36, %v1732_v56  ;;  %v1745_v21 = vsub.f32 %v5134_v24, %v5698_v32 }
 0x1c6   :  { %v1709_v26 = vand.u32 4294901760, %v5096_v55  ;;  %v5694_v28 = vand.u32 4294901760, %v5142_v14 }
 0x1c7   :  { %v5693_v57 = vand.u32 4294901760, %v5144_v17 }
 0x1c8   :  { %3990 = vmatpush3.bf16.msra.mxu1 %v5721_v50  ;;  %v5146_v50 = vpack.c.bf16 %v1640_v61, %v1637_v1  ;;  %v1773_v13 = vsub.f32 %v5142_v14, %v5694_v28 }
 0x1c9   :  { %3992 = vmatprep.subr.bf16.mxu1 %v5722_v51  ;;  %v5148_v51 = vsub.f32 %v1585_v42, %v1637_v1  ;;  %v1752_v42 = vsub.f32 %v5136_v20, %v5697_v0  ;;  %v1780_v39 = vsub.f32 %v5144_v17, %v5693_v57  ;;  %v4067_v57 = vpack.c.bf16 %v5140_v6, %v5138_v44 }
 0x1cb   :  { %v1753_v1 = vand.u32 4294901760, %v1752_v42  ;;  %v5692_v56 = vand.u32 4294901760, %v5148_v51 }
 0x1cc   :  { %3994 = vmatpush3.bf16.msra.mxu1 %v5723_v47  ;;  %v5150_v47 = vsub.f32 %v1586_v59, %v1640_v61  ;;  %v1746_v59 = vand.u32 4294901760, %v1745_v21  ;;  %v5696_v61 = vand.u32 4294901760, %v5138_v44 }
 0x1cd   :  { %3996 = vmatprep.subr.bf16.mxu1 %v5724_v12  ;;  %v1689_v12 = vsub.f32 %v5090_v31, %v1688_v15  ;;  %v1787_v42 = vsub.f32 %v5148_v51, %v5692_v56 }
 0x1ce   :  { %v5691_v36 = vand.u32 4294901760, %v5150_v47 }
 0x1cf   :  { %v1690_v25 = vand.u32 4294901760, %v1689_v12  ;;  %v5695_v12 = vand.u32 4294901760, %v5140_v6 }
 0x1d0   :  { %3998 = vmatpush3.bf16.msra.mxu1 %v5725_v63  ;;  %v1696_v63 = vsub.f32 %v5092_v37, %v1695_v27 }
 0x1d1   :  { %4000 = vmatprep.subr.bf16.mxu1 %v5726_v8  ;;  %v5729_v8 = vmov 0.0  }
 0x1d2   :  { %3375 = vmatprep.mubr.msk.f32.mxu0 %vm4489_vm1, %v5729_v8  ;;  %v1697_v38 = vand.u32 4294901760, %v1696_v63 }
 0x1d4   :  { %4002 = vmatpush3.bf16.msra.mxu1 %v5727_v58  ;;  %v1702_v58 = vand.u32 4294901760, %v5094_v43 }
 0x1d5   :  { %4147 = vmatprep.subr.bf16.mxu1 %v4488_v49 }
 0x1d6   :  { %v1703_v48 = vsub.f32 %v5094_v43, %v1702_v58 }
 0x1d7   :  { %1565 = vmatmul.mubr.f32.vlgmr.msra.gmra.mrb[6].mxu1 %v4980_v30  ;;  %v5088_v30 = vpack.c.bf16 %v1598_v5, %v1595_v60  ;;  %v1710_v60 = vsub.f32 %v5096_v55, %v1709_v26  ;;  %v5172_v5 = vpack.c.bf16 %v1697_v38, %v1690_v25  ;;  %v5206_v38 = vpack.c.bf16 %v1753_v1, %v1746_v59 }
 0x1d8   :  { %3585 = vmatprep.mubr.msk.f32.mxu1 %vm4489_vm1, %v5729_v8  ;;  %v1704_v45 = vand.u32 4294901760, %v1703_v48  ;;  %v1759_v48 = vsub.f32 %v5138_v44, %v5696_v61  ;;  %v1794_v59 = vsub.f32 %v5150_v47, %v5691_v36  ;;  %v1788_v1 = vand.u32 4294901760, %v1787_v42 }
 0x1d9   :  { %4005 = vmatpush3.bf16.msra.mxu0 %v5088_v30  ;;  %v1711_v41 = vand.u32 4294901760, %v1710_v60  ;;  %v1766_v60 = vsub.f32 %v5140_v6, %v5695_v12 }
 0x1da   :  { %4006 = vmatprep.subr.bf16.mxu0 %v4488_v49 }
 0x1db   :  { %v5176_v54 = vpack.c.bf16 %v1711_v41, %v1704_v45  ;;  %v1760_v41 = vand.u32 4294901760, %v1759_v48  ;;  %v1767_v2 = vand.u32 4294901760, %v1766_v60  ;;  %v4052_v48 = vpack.c.bf16 %v5092_v37, %v5090_v31 }
 0x1dc   :  { %v4055_v60 = vpack.c.bf16 %v5096_v55, %v5094_v43  ;;  %v5730_v31 = vand.u32 4294901760, %v5098_v7  ;;  %v5731_v37 = vand.u32 4294901760, %v5103_v10  ;;  %v5733_v43 = vand.u32 4294901760, %v5108_v34 }
 0x1dd   :  { %4008 = vmatpush3.bf16.msra.mxu0 %v5101_v18  ;;  %v4043_v33 = vpack.c.bf16 %v1767_v2, %v1760_v41  ;;  %v4058_v41 = vpack.c.bf16 %v5103_v10, %v5098_v7  ;;  %v5736_v7 = vand.u32 4294901760, %v5138_v44  ;;  %v5737_v10 = vand.u32 4294901760, %v5140_v6  ;;  %v2249_v6 = vld [vmem:[#allocation10 + $0x68] sm:$0xff] }
 0x1de   :  { %4009 = vmatprep.subr.bf16.mxu0 %v4488_v49 }
 0x1e1   :  { %4011 = vmatpush3.bf16.msra.mxu0 %v5111_v3 }
 0x1e2   :  { %4012 = vmatprep.subr.bf16.mxu0 %v4488_v49 }
 0x1e5   :  { %4014 = vmatpush3.bf16.msra.mxu0 %v5115_v19 }
 0x1e6   :  { %4015 = vmatprep.subr.bf16.mxu0 %v4488_v49 }
 0x1e9   :  { %4017 = vmatpush3.bf16.msra.mxu0 %v5120_v23 }
 0x1ea   :  { %4018 = vmatprep.subr.bf16.mxu0 %v4488_v49 }
 0x1ed   :  { %4020 = vmatpush3.bf16.msra.mxu0 %v5124_v22 }
 0x1ee   :  { %4021 = vmatprep.subr.bf16.mxu0 %v4488_v49 }
 0x1f1   :  { %4023 = vmatpush3.bf16.msra.mxu0 %v5128_v53 }
 0x1f2   :  { %4024 = vmatprep.subr.bf16.mxu0 %v4488_v49 }
 0x1f5   :  { %4026 = vmatpush3.bf16.msra.mxu0 %v5146_v50 }
 0x1f6   :  { %4027 = vmatprep.subr.bf16.mxu0 %v4488_v49 }
 0x244   :  { %v3031_v9 = vpop.f32.mrb[2].mxu0 }
 0x245   :  { %v3032_v40 = vpop.f32.mrb[3].mxu0 }
 0x246   :  { %v3033_v16 = vadd.f32 %v3032_v40, %v3031_v9  ;;  %v1774_v9 = vand.u32 4294901760, %v1773_v13  ;;  %v1781_v40 = vand.u32 4294901760, %v1780_v39 }
 0x248   :  { %v4046_v21 = vpack.c.bf16 %v1781_v40, %v1774_v9  ;;  %v4061_v9 = vpack.c.bf16 %v5108_v34, %v5106_v62  ;;  %v2925_v40 = vld [vmem:[%s5660_s4] ss:$0 sm:$0xff]  ;;  %v5739_v34 = vand.u32 4294901760, %v5144_v17 }
 0x24a   :  { %v2961_v63 = vpop.f32.mrb[0].mxu1 }
 0x24b   :  { %v2962_v25 = vpop.f32.mrb[1].mxu1 }
 0x24c   :  { %v2963_v45 = vadd.f32 %v2962_v25, %v2961_v63  ;;  %v1795_v63 = vand.u32 4294901760, %v1794_v59  ;;  %v4064_v59 = vpack.c.bf16 %v5136_v20, %v5134_v24 }
 0x24e   :  { %v4049_v25 = vpack.c.bf16 %v1795_v63, %v1788_v1  ;;  %v817_v63 = vadd.f32 %v2963_v45, %v2925_v40 }
 0x264   :  { %v3101_v2 = vpop.f32.mrb[4].mxu0 }
 0x265   :  { %v3102_v13 = vpop.f32.mrb[5].mxu0 }
 0x266   :  { %v3103_v39 = vadd.f32 %v3102_v13, %v3101_v2  ;;  %v4070_v2 = vpack.c.bf16 %v5144_v17, %v5142_v14  ;;  %v4073_v13 = vpack.c.bf16 %v5150_v47, %v5148_v51  ;;  %v2250_v17 = vld [vmem:[#allocation10 + $0x70] sm:$0xff] }
 0x26a   :  { %v2996_v42 = vpop.f32.mrb[2].mxu1 }
 0x26b   :  { %v2997_v1 = vpop.f32.mrb[3].mxu1 }
 0x26c   :  { %v2998_v36 = vadd.f32 %v2997_v1, %v2996_v42 }
 0x26e   :  { %v1049_v56 = vadd.f32 %v2998_v36, %v817_v63 }
 0x270   :  { %v1187_v28 = vadd.f32 %v3033_v16, %v1049_v56 }
 0x28a   :  { %v3066_v12 = vpop.f32.mrb[4].mxu1 }
 0x28b   :  { %v3067_v61 = vpop.f32.mrb[5].mxu1 }
 0x28c   :  { %v3068_v0 = vadd.f32 %v3067_v61, %v3066_v12 }
 0x28e   :  { %v1295_v32 = vadd.f32 %v3068_v0, %v1187_v28  ;;  %v2240_v0 = vld [vmem:[#allocation10 + $0x20] sm:$0xff]  ;;  %v2242_v28 = vld [vmem:[#allocation10 + $0x30] sm:$0xff] }
 0x28f   :  { %v2272_v12 = vand.u32 4294901760, %v2240_v0 }
 0x290   :  { %v1463_v29 = vadd.f32 %v3103_v39, %v1295_v32 }
 0x2aa   :  { %v3136_v11 = vpop.f32.mrb[6].mxu1 }
 0x2ab   :  { %v3137_v46 = vpop.f32.mrb[7].mxu1 }
 0x2ac   :  { %v3138_v45 = vadd.f32 %v3137_v46, %v3136_v11  ;;  %v2237_v46 = vld [vmem:[#allocation10 + $0x8] sm:$0xff] }
 0x2ae   :  { %v1567_v40 = vadd.f32 %v3138_v45, %v1463_v29  ;;  %v2263_v29 = vand.u32 4294901760, %v2237_v46 }
 0x2b0   :  { %v1570_v36 = vmax.f32 %v1567_v40, 0.0  ;;  %v5281_v39 = vsub.f32 %v2237_v46, %v2263_v29  ;;  %v2245_v40 = vld [vmem:[#allocation10 + $0x48] sm:$0xff] }
 0x2b2   :  { %v5249_v42 = vand.u32 4294901760, %v1570_v36 }
 0x2b4   :  { %v5252_v16 = vsub.f32 %v1570_v36, %v5249_v42 }
 0x2b6   :  { %v1677_v56 = vand.u32 4294901760, %v5252_v16 }
 0x2b8   :  { %v1678_v1 = vsub.f32 %v5252_v16, %v1677_v56 }
 0x2ba   :  { %v1679_v63 = vand.u32 4294901760, %v1678_v1 }
 0x2bc   :  { %3376 = vmatmul.mubr.f32.vlgmr.msra.gmra.mrb[6].mxu0 %v1679_v63  ;;  %v5289_v63 = vsub.f32 %v2240_v0, %v2272_v12 }
 0x2bd   :  { %4029 = vmatpush3.bf16.msra.mxu0 %v5172_v5  ;;  %3410 = vmatprep.mubr.msk.f32.mxu0 %vm4489_vm1, %v5729_v8  ;;  %v2236_v5 = vld [vmem:[#allocation10] sm:$0xff] }
 0x2be   :  { %4030 = vmatprep.subr.bf16.mxu0 %v4488_v49  ;;  %v2260_v11 = vand.u32 4294901760, %v2236_v5 }
 0x2c1   :  { %4032 = vmatpush3.bf16.msra.mxu0 %v5176_v54  ;;  %v2238_v54 = vld [vmem:[#allocation10 + $0x10] sm:$0xff] }
 0x2c2   :  { %4033 = vmatprep.subr.bf16.mxu0 %v4488_v49  ;;  %v2266_v32 = vand.u32 4294901760, %v2238_v54 }
 0x2c4   :  { %v5283_v45 = vsub.f32 %v2238_v54, %v2266_v32  ;;  %v2287_v54 = vand.u32 4294901760, %v2245_v40 }
 0x2c5   :  { %4035 = vmatpush3.bf16.msra.mxu0 %v5186_v35  ;;  %v2239_v35 = vld [vmem:[#allocation10 + $0x18] sm:$0xff] }
 0x2c6   :  { %4036 = vmatprep.subr.bf16.mxu0 %v4488_v49  ;;  %v2269_v61 = vand.u32 4294901760, %v2239_v35  ;;  %v5305_v0 = vsub.f32 %v2245_v40, %v2287_v54 }
 0x2c8   :  { %v5285_v36 = vpack.c.bf16 %v2269_v61, %v2266_v32  ;;  %v5287_v1 = vsub.f32 %v2239_v35, %v2269_v61 }
 0x2c9   :  { %4038 = vmatpush3.bf16.msra.mxu0 %v5196_v52  ;;  %v2241_v52 = vld [vmem:[#allocation10 + $0x28] sm:$0xff] }
 0x2ca   :  { %4039 = vmatprep.subr.bf16.mxu0 %v4488_v49 }
 0x2cd   :  { %4041 = vmatpush3.bf16.msra.mxu0 %v5206_v38  ;;  %v2275_v38 = vand.u32 4294901760, %v2241_v52 }
 0x2ce   :  { %4042 = vmatprep.subr.bf16.mxu0 %v4488_v49 }
 0x2cf   :  { %v5295_v4 = vsub.f32 %v2241_v52, %v2275_v38 }
 0x2d1   :  { %4044 = vmatpush3.bf16.msra.mxu0 %v4043_v33  ;;  %v2243_v33 = vld [vmem:[#allocation10 + $0x38] sm:$0xff] }
 0x2d2   :  { %4045 = vmatprep.subr.bf16.mxu0 %v4488_v49  ;;  %v2281_v46 = vand.u32 4294901760, %v2243_v33 }
 0x2d4   :  { %v5301_v35 = vsub.f32 %v2243_v33, %v2281_v46 }
 0x2d5   :  { %4047 = vmatpush3.bf16.msra.mxu0 %v4046_v21  ;;  %v2244_v21 = vld [vmem:[#allocation10 + $0x40] sm:$0xff] }
 0x2d6   :  { %4048 = vmatprep.subr.bf16.mxu0 %v4488_v49 }
 0x2d9   :  { %4050 = vmatpush3.bf16.msra.mxu0 %v4049_v25  ;;  %v5277_v25 = vpack.c.bf16 %v2263_v29, %v2260_v11 }
 0x2da   :  { %4051 = vmatprep.subr.bf16.mxu0 %v4488_v49 }
 0x2db   :  { %4149 = vmatpush3.bf16.msra.mxu1 %v5277_v25 }
 0x2dc   :  { %3411 = vmatmul.mubr.f32.vlgmr.msra.gmra.mrb[6].mxu0 %v5249_v42  ;;  %4150 = vmatprep.subr.bf16.mxu1 %v4488_v49 }
 0x2dd   :  { %4053 = vmatpush3.bf16.msra.mxu0 %v4052_v48  ;;  %3445 = vmatprep.mubr.msk.f32.mxu0 %vm4489_vm1, %v5729_v8  ;;  %v5279_v48 = vsub.f32 %v2236_v5, %v2260_v11  ;;  %v2278_v5 = vand.u32 4294901760, %v2242_v28  ;;  %v2284_v11 = vand.u32 4294901760, %v2244_v21 }
 0x2de   :  { %4054 = vmatprep.subr.bf16.mxu0 %v4488_v49 }
 0x2df   :  { %v5299_v29 = vsub.f32 %v2242_v28, %v2278_v5  ;;  %v5303_v32 = vsub.f32 %v2244_v21, %v2284_v11  ;;  %4152 = vmatpush3.bf16.msra.mxu1 %v5285_v36  ;;  %v5319_v52 = vpack.c.bf16 %v2281_v46, %v2278_v5 }
 0x2e0   :  { %4153 = vmatprep.subr.bf16.mxu1 %v4488_v49 }
 0x2e1   :  { %4056 = vmatpush3.bf16.msra.mxu0 %v4055_v60  ;;  %v5311_v60 = vpack.c.bf16 %v2275_v38, %v2272_v12 }
 0x2e2   :  { %4057 = vmatprep.subr.bf16.mxu0 %v4488_v49 }
 0x2e3   :  { %4155 = vmatpush3.bf16.msra.mxu1 %v5311_v60 }
 0x2e4   :  { %4156 = vmatprep.subr.bf16.mxu1 %v4488_v49 }
 0x2e5   :  { %4059 = vmatpush3.bf16.msra.mxu0 %v4058_v41  ;;  %v5327_v41 = vpack.c.bf16 %v2287_v54, %v2284_v11 }
 0x2e6   :  { %4060 = vmatprep.subr.bf16.mxu0 %v4488_v49 }
 0x2e7   :  { %4158 = vmatpush3.bf16.msra.mxu1 %v5319_v52 }
 0x2e8   :  { %4159 = vmatprep.subr.bf16.mxu1 %v4488_v49 }
 0x2e9   :  { %4062 = vmatpush3.bf16.msra.mxu0 %v4061_v9  ;;  %v4103_v9 = vpack.c.bf16 %v1709_v26, %v1702_v58  ;;  %v5734_v58 = vand.u32 4294901760, %v5134_v24  ;;  %v5735_v26 = vand.u32 4294901760, %v5136_v20  ;;  %v5740_v24 = vand.u32 4294901760, %v5148_v51 }
 0x2ea   :  { %4063 = vmatprep.subr.bf16.mxu0 %v4488_v49  ;;  %v5741_v20 = vand.u32 4294901760, %v5150_v47  ;;  %v2302_v51 = vand.u32 4294901760, %v2250_v17 }
 0x2eb   :  { %4161 = vmatpush3.bf16.msra.mxu1 %v5327_v41 }
 0x2ec   :  { %4162 = vmatprep.subr.bf16.mxu1 %v4488_v49  ;;  %v5454_v5 = vsub.f32 %v2250_v17, %v2302_v51 }
 0x2ed   :  { %4065 = vmatpush3.bf16.msra.mxu0 %v4064_v59  ;;  %v4112_v59 = vpack.c.bf16 %v5735_v26, %v5734_v58 }
 0x2ee   :  { %4066 = vmatprep.subr.bf16.mxu0 %v4488_v49 }
 0x2f1   :  { %4068 = vmatpush3.bf16.msra.mxu0 %v4067_v57  ;;  %v4100_v57 = vpack.c.bf16 %v1695_v27, %v1688_v15  ;;  %v4106_v15 = vpack.c.bf16 %v5731_v37, %v5730_v31  ;;  %v5732_v27 = vand.u32 4294901760, %v5106_v62  ;;  %v5738_v62 = vand.u32 4294901760, %v5142_v14 }
 0x2f2   :  { %4069 = vmatprep.subr.bf16.mxu0 %v4488_v49  ;;  %v2299_v14 = vand.u32 4294901760, %v2249_v6 }
 0x2f3   :  { %v4109_v55 = vpack.c.bf16 %v5733_v43, %v5732_v27  ;;  %v2381_v27 = vand.u32 4294901760, %v5289_v63  ;;  %v2388_v43 = vand.u32 4294901760, %v5295_v4 }
 0x2f4   :  { %v5451_v40 = vsub.f32 %v2249_v6, %v2299_v14 }
 0x2f5   :  { %4071 = vmatpush3.bf16.msra.mxu0 %v4070_v2  ;;  %v4115_v2 = vpack.c.bf16 %v5737_v10, %v5736_v7  ;;  %v2382_v26 = vsub.f32 %v5289_v63, %v2381_v27 }
 0x2f6   :  { %4072 = vmatprep.subr.bf16.mxu0 %v4488_v49 }
 0x2f7   :  { %v2383_v10 = vand.u32 4294901760, %v2382_v26 }
 0x2f9   :  { %4074 = vmatpush3.bf16.msra.mxu0 %v4073_v13  ;;  %v4118_v13 = vpack.c.bf16 %v5739_v34, %v5738_v62  ;;  %v2395_v62 = vand.u32 4294901760, %v5299_v29  ;;  %v2402_v34 = vand.u32 4294901760, %v5301_v35 }
 0x2fa   :  { %4075 = vmatprep.subr.bf16.mxu0 %v4488_v49 }
 0x2fc   :  { %3446 = vmatmul.mubr.f32.vlgmr.msra.gmra.mrb[6].mxu0 %v5252_v16  ;;  %v4121_v16 = vpack.c.bf16 %v5741_v20, %v5740_v24  ;;  %v2396_v24 = vsub.f32 %v5299_v29, %v2395_v62  ;;  %v2403_v20 = vsub.f32 %v5301_v35, %v2402_v34 }
 0x2fd   :  { %4077 = vmatpush3.bf16.msra.mxu0 %v5088_v30  ;;  %3480 = vmatprep.mubr.msk.f32.mxu0 %vm4489_vm1, %v5729_v8 }
 0x2fe   :  { %4078 = vmatprep.subr.bf16.mxu0 %v4488_v49 }
 0x301   :  { %4080 = vmatpush3.bf16.msra.mxu0 %v5101_v18 }
 0x302   :  { %4081 = vmatprep.subr.bf16.mxu0 %v4488_v49 }
 0x305   :  { %4083 = vmatpush3.bf16.msra.mxu0 %v5111_v3 }
 0x306   :  { %4084 = vmatprep.subr.bf16.mxu0 %v4488_v49 }
 0x309   :  { %4086 = vmatpush3.bf16.msra.mxu0 %v5115_v19 }
 0x30a   :  { %4087 = vmatprep.subr.bf16.mxu0 %v4488_v49 }
 0x30d   :  { %4089 = vmatpush3.bf16.msra.mxu0 %v5120_v23 }
 0x30e   :  { %4090 = vmatprep.subr.bf16.mxu0 %v4488_v49 }
 0x311   :  { %4092 = vmatpush3.bf16.msra.mxu0 %v5124_v22 }
 0x312   :  { %4093 = vmatprep.subr.bf16.mxu0 %v4488_v49 }
 0x315   :  { %4095 = vmatpush3.bf16.msra.mxu0 %v5128_v53 }
 0x316   :  { %4096 = vmatprep.subr.bf16.mxu0 %v4488_v49 }
 0x319   :  { %4098 = vmatpush3.bf16.msra.mxu0 %v5146_v50 }
 0x31a   :  { %4099 = vmatprep.subr.bf16.mxu0 %v4488_v49 }
 0x31c   :  { %3481 = vmatmul.mubr.f32.vlgmr.msra.gmra.mrb[6].mxu0 %v1677_v56  ;;  %v2360_v56 = vand.u32 4294901760, %v5281_v39 }
 0x31d   :  { %4101 = vmatpush3.bf16.msra.mxu0 %v4100_v57  ;;  %3515 = vmatprep.mubr.msk.f32.mxu0 %vm4489_vm1, %v5729_v8  ;;  %v2367_v57 = vand.u32 4294901760, %v5283_v45 }
 0x31e   :  { %4102 = vmatprep.subr.bf16.mxu0 %v4488_v49  ;;  %v2361_v38 = vsub.f32 %v5281_v39, %v2360_v56 }
 0x31f   :  { %v2368_v37 = vsub.f32 %v5283_v45, %v2367_v57 }
 0x320   :  { %v2362_v54 = vand.u32 4294901760, %v2361_v38 }
 0x321   :  { %4104 = vmatpush3.bf16.msra.mxu0 %v4103_v9  ;;  %v2374_v9 = vand.u32 4294901760, %v5287_v1 }
 0x322   :  { %4105 = vmatprep.subr.bf16.mxu0 %v4488_v49 }
 0x325   :  { %4107 = vmatpush3.bf16.msra.mxu0 %v4106_v15  ;;  %v2375_v15 = vsub.f32 %v5287_v1, %v2374_v9 }
 0x326   :  { %4108 = vmatprep.subr.bf16.mxu0 %v4488_v49 }
 0x327   :  { %v2376_v58 = vand.u32 4294901760, %v2375_v15 }
 0x329   :  { %4110 = vmatpush3.bf16.msra.mxu0 %v4109_v55  ;;  %v2369_v55 = vand.u32 4294901760, %v2368_v37  ;;  %v5705_v37 = vand.u32 4294901760, %v5451_v40 }
 0x32a   :  { %4111 = vmatprep.subr.bf16.mxu0 %v4488_v49 }
 0x32b   :  { %v4175_v7 = vpack.c.bf16 %v2376_v58, %v2369_v55  ;;  %v2445_v58 = vsub.f32 %v5451_v40, %v5705_v37 }
 0x32d   :  { %4113 = vmatpush3.bf16.msra.mxu0 %v4112_v59  ;;  %v2389_v59 = vsub.f32 %v5295_v4, %v2388_v43 }
 0x32e   :  { %4114 = vmatprep.subr.bf16.mxu0 %v4488_v49 }
 0x331   :  { %4116 = vmatpush3.bf16.msra.mxu0 %v4115_v2  ;;  %v2390_v2 = vand.u32 4294901760, %v2389_v59  ;;  %v2446_v59 = vand.u32 4294901760, %v2445_v58 }
 0x332   :  { %4117 = vmatprep.subr.bf16.mxu0 %v4488_v49 }
 0x335   :  { %4119 = vmatpush3.bf16.msra.mxu0 %v4118_v13  ;;  %v4178_v13 = vpack.c.bf16 %v2390_v2, %v2383_v10  ;;  %v5704_v10 = vand.u32 4294901760, %v5454_v5 }
 0x336   :  { %4120 = vmatprep.subr.bf16.mxu0 %v4488_v49 }
 0x339   :  { %4122 = vmatpush3.bf16.msra.mxu0 %v4121_v16  ;;  %v2397_v16 = vand.u32 4294901760, %v2396_v24 }
 0x33a   :  { %4123 = vmatprep.subr.bf16.mxu0 %v4488_v49 }
 0x33c   :  { %3516 = vmatmul.mubr.f32.vlgmr.msra.gmra.mrb[6].mxu0 %v5249_v42 }
 0x33d   :  { %4125 = vmatpush3.bf16.msra.mxu0 %v5088_v30  ;;  %3550 = vmatprep.mubr.msk.f32.mxu0 %vm4489_vm1, %v5729_v8  ;;  %v2246_v30 = vld [vmem:[#allocation10 + $0x50] sm:$0xff] }
 0x33e   :  { %4126 = vmatprep.subr.bf16.mxu0 %v4488_v49 }
 0x341   :  { %4128 = vmatpush3.bf16.msra.mxu0 %v5101_v18  ;;  %v2247_v18 = vld [vmem:[#allocation10 + $0x58] sm:$0xff] }
 0x342   :  { %4129 = vmatprep.subr.bf16.mxu0 %v4488_v49 }
 0x345   :  { %4131 = vmatpush3.bf16.msra.mxu0 %v5111_v3  ;;  %v2290_v3 = vand.u32 4294901760, %v2246_v30 }
 0x346   :  { %4132 = vmatprep.subr.bf16.mxu0 %v4488_v49 }
 0x347   :  { %v5445_v28 = vsub.f32 %v2246_v30, %v2290_v3  ;;  %v2404_v30 = vand.u32 4294901760, %v2403_v20  ;;  %v2452_v20 = vsub.f32 %v5454_v5, %v5704_v10 }
 0x349   :  { %4134 = vmatpush3.bf16.msra.mxu0 %v5115_v19  ;;  %v2293_v19 = vand.u32 4294901760, %v2247_v18  ;;  %v2423_v17 = vand.u32 4294901760, %v5445_v28 }
 0x34a   :  { %4135 = vmatprep.subr.bf16.mxu0 %v4488_v49 }
 0x34b   :  { %v5427_v44 = vpack.c.bf16 %v2293_v19, %v2290_v3  ;;  %v5447_v33 = vsub.f32 %v2247_v18, %v2293_v19  ;;  %v2409_v18 = vand.u32 4294901760, %v5303_v32  ;;  %v2416_v3 = vand.u32 4294901760, %v5305_v0 }
 0x34c   :  { %v4181_v19 = vpack.c.bf16 %v2404_v30, %v2397_v16  ;;  %v2453_v30 = vand.u32 4294901760, %v2452_v20 }
 0x34d   :  { %4137 = vmatpush3.bf16.msra.mxu0 %v5120_v23  ;;  %v2248_v23 = vld [vmem:[#allocation10 + $0x60] sm:$0xff]  ;;  %4164 = vmatpush3.bf16.msra.mxu1 %v5427_v44  ;;  %v2417_v6 = vsub.f32 %v5305_v0, %v2416_v3 }
 0x34e   :  { %4138 = vmatprep.subr.bf16.mxu0 %v4488_v49  ;;  %4165 = vmatprep.subr.bf16.mxu1 %v4488_v49 }
 0x351   :  { %4140 = vmatpush3.bf16.msra.mxu0 %v5124_v22  ;;  %v2296_v22 = vand.u32 4294901760, %v2248_v23 }
 0x352   :  { %4141 = vmatprep.subr.bf16.mxu0 %v4488_v49 }
 0x353   :  { %v5449_v21 = vsub.f32 %v2248_v23, %v2296_v22  ;;  %v2410_v23 = vsub.f32 %v5303_v32, %v2409_v18 }
 0x355   :  { %4143 = vmatpush3.bf16.msra.mxu0 %v5128_v53  ;;  %v5431_v53 = vpack.c.bf16 %v2299_v14, %v2296_v22  ;;  %v2411_v22 = vand.u32 4294901760, %v2410_v23  ;;  %v2418_v14 = vand.u32 4294901760, %v2417_v6 }
 0x356   :  { %4144 = vmatprep.subr.bf16.mxu0 %v4488_v49 }
 0x357   :  { %4167 = vmatpush3.bf16.msra.mxu1 %v5431_v53 }
 0x358   :  { %4168 = vmatprep.subr.bf16.mxu1 %v4488_v49 }
 0x359   :  { %4146 = vmatpush3.bf16.msra.mxu0 %v5146_v50  ;;  %v2251_v50 = vld [vmem:[#allocation10 + $0x78] sm:$0xff] }
 0x35a   :  { %v2305_v47 = vand.u32 4294901760, %v2251_v50 }
 0x35c   :  { %3551 = vmatmul.mubr.f32.vlgmr.msra.gmra.mrb[6].mxu0 %v5249_v42  ;;  %v2353_v42 = vand.u32 4294901760, %v5279_v48  ;;  %v5437_v61 = vpack.c.bf16 %v2305_v47, %v2302_v51  ;;  %v5456_v46 = vsub.f32 %v2251_v50, %v2305_v47  ;;  %v2430_v50 = vand.u32 4294901760, %v5447_v33 }
 0x35d   :  { %v4184_v51 = vpack.c.bf16 %v2418_v14, %v2411_v22  ;;  %v2424_v47 = vsub.f32 %v5445_v28, %v2423_v17  ;;  %v4196_v22 = vpack.c.bf16 %v5281_v39, %v5279_v48  ;;  %v4199_v14 = vpack.c.bf16 %v5287_v1, %v5283_v45 }
 0x35e   :  { %v2354_v12 = vsub.f32 %v5279_v48, %v2353_v42  ;;  %4170 = vmatpush3.bf16.msra.mxu1 %v5437_v61  ;;  %v5703_v2 = vand.u32 4294901760, %v5456_v46  ;;  %v4217_v58 = vpack.c.bf16 %v5456_v46, %v5454_v5  ;;  %v4250_v48 = vpack.c.bf16 %v2388_v43, %v2381_v27 }
 0x35f   :  { %4171 = vmatprep.subr.bf16.mxu1 %v4488_v49  ;;  %v2425_v38 = vand.u32 4294901760, %v2424_v47  ;;  %v4202_v47 = vpack.c.bf16 %v5295_v4, %v5289_v63  ;;  %v4253_v39 = vpack.c.bf16 %v2402_v34, %v2395_v62  ;;  %v4256_v45 = vpack.c.bf16 %v2416_v3, %v2409_v18 }
 0x360   :  { %v2355_v11 = vand.u32 4294901760, %v2354_v12  ;;  %v2431_v12 = vsub.f32 %v5447_v33, %v2430_v50  ;;  %v2459_v16 = vsub.f32 %v5456_v46, %v5703_v2  ;;  %v4259_v4 = vpack.c.bf16 %v2430_v50, %v2423_v17 }
 0x361   :  { %v5742_v1 = vand.u32 4294901760, %v5449_v21  ;;  %v5743_v63 = vand.u32 4294901760, %v5451_v40 }
 0x362   :  { %v5461_v31 = vpack.c.bf16 %v2362_v54, %v2355_v11  ;;  %v2432_v11 = vand.u32 4294901760, %v2431_v12  ;;  %v5706_v54 = vand.u32 4294901760, %v5449_v21  ;;  %v2460_v23 = vand.u32 4294901760, %v2459_v16 }
 0x363   :  { %v4205_v12 = vpack.c.bf16 %v5301_v35, %v5299_v29  ;;  %v4262_v29 = vpack.c.bf16 %v5743_v63, %v5742_v1  ;;  %v5744_v35 = vand.u32 4294901760, %v5454_v5 }
 0x364   :  { %v4187_v15 = vpack.c.bf16 %v2432_v11, %v2425_v38  ;;  %v2438_v55 = vsub.f32 %v5449_v21, %v5706_v54  ;;  %v4193_v6 = vpack.c.bf16 %v2460_v23, %v2453_v30  ;;  %v4208_v38 = vpack.c.bf16 %v5305_v0, %v5303_v32 }
 0x365   :  { %v4211_v11 = vpack.c.bf16 %v5447_v33, %v5445_v28  ;;  %v5745_v32 = vand.u32 4294901760, %v5456_v46 }
 0x366   :  { %v2439_v26 = vand.u32 4294901760, %v2438_v55  ;;  %v4214_v55 = vpack.c.bf16 %v5451_v40, %v5449_v21 }
 0x367   :  { %v4265_v0 = vpack.c.bf16 %v5745_v32, %v5744_v35 }
 0x368   :  { %v4190_v24 = vpack.c.bf16 %v2446_v59, %v2439_v26  ;;  %v2926_v26 = vld [vmem:[%s5662_s6] ss:$0 sm:$0xff] }
 0x42f   :  { %v2231_v59 = vpop.f32.mrb[6].mxu0 }
 0x430   :  { %v4293_v20 = vadd.f32 %v2926_v26, %v2231_v59  ;;  %v3552_v16 = vpop.f32.mrb[7].mxu0 }
 0x432   :  { %v2235_v30 = vmax.f32 %v4293_v20, 0.0 }
 0x434   :  { %v5536_v23 = vand.u32 4294901760, %v2235_v30 }
 0x436   :  { %v2341_v2 = vsub.f32 %v2235_v30, %v5536_v23 }
 0x438   :  { %v2342_v10 = vand.u32 4294901760, %v2341_v2 }
 0x43a   :  { %v2343_v37 = vsub.f32 %v2341_v2, %v2342_v10 }
 0x43c   :  { %v2344_v54 = vand.u32 4294901760, %v2343_v37 }
 0x43e   :  { %3586 = vmatmul.mubr.f32.vlgmr.msra.gmra.mrb[8].mxu1 %v2344_v54 }
 0x43f   :  { %4173 = vmatpush3.bf16.msra.mxu1 %v5461_v31  ;;  %3620 = vmatprep.mubr.msk.f32.mxu1 %vm4489_vm1, %v5729_v8  ;;  %v4244_v31 = vpack.c.bf16 %v2360_v56, %v2353_v42 }
 0x440   :  { %4174 = vmatprep.subr.bf16.mxu1 %v4488_v49 }
 0x443   :  { %4176 = vmatpush3.bf16.msra.mxu1 %v4175_v7  ;;  %v4247_v7 = vpack.c.bf16 %v2374_v9, %v2367_v57 }
 0x444   :  { %4177 = vmatprep.subr.bf16.mxu1 %v4488_v49 }
 0x447   :  { %4179 = vmatpush3.bf16.msra.mxu1 %v4178_v13 }
 0x448   :  { %4180 = vmatprep.subr.bf16.mxu1 %v4488_v49 }
 0x44b   :  { %4182 = vmatpush3.bf16.msra.mxu1 %v4181_v19 }
 0x44c   :  { %4183 = vmatprep.subr.bf16.mxu1 %v4488_v49 }
 0x44f   :  { %4185 = vmatpush3.bf16.msra.mxu1 %v4184_v51 }
 0x450   :  { %4186 = vmatprep.subr.bf16.mxu1 %v4488_v49 }
 0x453   :  { %4188 = vmatpush3.bf16.msra.mxu1 %v4187_v15 }
 0x454   :  { %4189 = vmatprep.subr.bf16.mxu1 %v4488_v49 }
 0x457   :  { %4191 = vmatpush3.bf16.msra.mxu1 %v4190_v24 }
 0x458   :  { %4192 = vmatprep.subr.bf16.mxu1 %v4488_v49 }
 0x45b   :  { %4194 = vmatpush3.bf16.msra.mxu1 %v4193_v6 }
 0x45c   :  { %4195 = vmatprep.subr.bf16.mxu1 %v4488_v49 }
 0x45e   :  { %3621 = vmatmul.mubr.f32.vlgmr.msra.gmra.mrb[8].mxu1 %v5536_v23 }
 0x45f   :  { %4197 = vmatpush3.bf16.msra.mxu1 %v4196_v22  ;;  %3655 = vmatprep.mubr.msk.f32.mxu1 %vm4489_vm1, %v5729_v8 }
 0x460   :  { %4198 = vmatprep.subr.bf16.mxu1 %v4488_v49 }
 0x463   :  { %4200 = vmatpush3.bf16.msra.mxu1 %v4199_v14 }
 0x464   :  { %4201 = vmatprep.subr.bf16.mxu1 %v4488_v49 }
 0x467   :  { %4203 = vmatpush3.bf16.msra.mxu1 %v4202_v47 }
 0x468   :  { %4204 = vmatprep.subr.bf16.mxu1 %v4488_v49 }
 0x46b   :  { %4206 = vmatpush3.bf16.msra.mxu1 %v4205_v12 }
 0x46c   :  { %4207 = vmatprep.subr.bf16.mxu1 %v4488_v49 }
 0x46f   :  { %4209 = vmatpush3.bf16.msra.mxu1 %v4208_v38 }
 0x470   :  { %4210 = vmatprep.subr.bf16.mxu1 %v4488_v49 }
 0x473   :  { %4212 = vmatpush3.bf16.msra.mxu1 %v4211_v11 }
 0x474   :  { %4213 = vmatprep.subr.bf16.mxu1 %v4488_v49 }
 0x477   :  { %4215 = vmatpush3.bf16.msra.mxu1 %v4214_v55 }
 0x478   :  { %4216 = vmatprep.subr.bf16.mxu1 %v4488_v49 }
 0x47b   :  { %4218 = vmatpush3.bf16.msra.mxu1 %v4217_v58 }
 0x47c   :  { %4219 = vmatprep.subr.bf16.mxu1 %v4488_v49 }
 0x47e   :  { %3656 = vmatmul.mubr.f32.vlgmr.msra.gmra.mrb[8].mxu1 %v2341_v2 }
 0x47f   :  { %4221 = vmatpush3.bf16.msra.mxu1 %v5277_v25  ;;  %3690 = vmatprep.mubr.msk.f32.mxu1 %vm4489_vm1, %v5729_v8 }
 0x480   :  { %4222 = vmatprep.subr.bf16.mxu1 %v4488_v49 }
 0x483   :  { %4224 = vmatpush3.bf16.msra.mxu1 %v5285_v36 }
 0x484   :  { %4225 = vmatprep.subr.bf16.mxu1 %v4488_v49 }
 0x487   :  { %4227 = vmatpush3.bf16.msra.mxu1 %v5311_v60 }
 0x488   :  { %4228 = vmatprep.subr.bf16.mxu1 %v4488_v49 }
 0x48b   :  { %4230 = vmatpush3.bf16.msra.mxu1 %v5319_v52 }
 0x48c   :  { %4231 = vmatprep.subr.bf16.mxu1 %v4488_v49 }
 0x48f   :  { %4233 = vmatpush3.bf16.msra.mxu1 %v5327_v41 }
 0x490   :  { %4234 = vmatprep.subr.bf16.mxu1 %v4488_v49 }
 0x493   :  { %4236 = vmatpush3.bf16.msra.mxu1 %v5427_v44 }
 0x494   :  { %4237 = vmatprep.subr.bf16.mxu1 %v4488_v49 }
 0x497   :  { %4239 = vmatpush3.bf16.msra.mxu1 %v5431_v53 }
 0x498   :  { %4240 = vmatprep.subr.bf16.mxu1 %v4488_v49 }
 0x49b   :  { %4242 = vmatpush3.bf16.msra.mxu1 %v5437_v61 }
 0x49c   :  { %4243 = vmatprep.subr.bf16.mxu1 %v4488_v49 }
 0x49e   :  { %3691 = vmatmul.mubr.f32.vlgmr.msra.gmra.mrb[8].mxu1 %v2342_v10 }
 0x49f   :  { %4245 = vmatpush3.bf16.msra.mxu1 %v4244_v31  ;;  %3725 = vmatprep.mubr.msk.f32.mxu1 %vm4489_vm1, %v5729_v8 }
 0x4a0   :  { %4246 = vmatprep.subr.bf16.mxu1 %v4488_v49 }
 0x4a3   :  { %4248 = vmatpush3.bf16.msra.mxu1 %v4247_v7 }
 0x4a4   :  { %4249 = vmatprep.subr.bf16.mxu1 %v4488_v49 }
 0x4a7   :  { %4251 = vmatpush3.bf16.msra.mxu1 %v4250_v48 }
 0x4a8   :  { %4252 = vmatprep.subr.bf16.mxu1 %v4488_v49 }
 0x4ab   :  { %4254 = vmatpush3.bf16.msra.mxu1 %v4253_v39 }
 0x4ac   :  { %4255 = vmatprep.subr.bf16.mxu1 %v4488_v49 }
 0x4af   :  { %4257 = vmatpush3.bf16.msra.mxu1 %v4256_v45 }
 0x4b0   :  { %4258 = vmatprep.subr.bf16.mxu1 %v4488_v49 }
 0x4b3   :  { %4260 = vmatpush3.bf16.msra.mxu1 %v4259_v4 }
 0x4b4   :  { %4261 = vmatprep.subr.bf16.mxu1 %v4488_v49 }
 0x4b7   :  { %4263 = vmatpush3.bf16.msra.mxu1 %v4262_v29 }
 0x4b8   :  { %4264 = vmatprep.subr.bf16.mxu1 %v4488_v49 }
 0x4bb   :  { %4266 = vmatpush3.bf16.msra.mxu1 %v4265_v0 }
 0x4bc   :  { %4267 = vmatprep.subr.bf16.mxu1 %v4488_v49 }
 0x4be   :  { %3726 = vmatmul.mubr.f32.vlgmr.msra.gmra.mrb[8].mxu1 %v5536_v23 }
 0x4bf   :  { %4269 = vmatpush3.bf16.msra.mxu1 %v5277_v25  ;;  %3760 = vmatprep.mubr.msk.f32.mxu1 %vm4489_vm1, %v5729_v8  ;;  %v2927_v8 = vld [vmem:[%s5664_s8] ss:$0 sm:$0xff] }
 0x4c0   :  { %4270 = vmatprep.subr.bf16.mxu1 %v4488_v49 }
 0x4c3   :  { %4272 = vmatpush3.bf16.msra.mxu1 %v5285_v36  ;;  %v5746_v36 = vlaneseq }
 0x4c4   :  { %4273 = vmatprep.subr.bf16.mxu1 %v4488_v49 }
 0x4c7   :  { %4275 = vmatpush3.bf16.msra.mxu1 %v5311_v60  ;;  %v2901_v60 = vand.u32 127, %v5746_v36 }
 0x4c8   :  { %4276 = vmatprep.subr.bf16.mxu1 %v4488_v49 }
 0x4c9   :  { %vm2904_vm2 = vcmp.lt.s32.totalorder %v2901_v60, 8 }
 0x4cb   :  { %4278 = vmatpush3.bf16.msra.mxu1 %v5319_v52 }
 0x4cc   :  { %4279 = vmatprep.subr.bf16.mxu1 %v4488_v49 }
 0x4cf   :  { %4281 = vmatpush3.bf16.msra.mxu1 %v5327_v41 }
 0x4d0   :  { %4282 = vmatprep.subr.bf16.mxu1 %v4488_v49 }
 0x4d3   :  { %4284 = vmatpush3.bf16.msra.mxu1 %v5427_v44 }
 0x4d4   :  { %4285 = vmatprep.subr.bf16.mxu1 %v4488_v49 }
 0x4d7   :  { %4287 = vmatpush3.bf16.msra.mxu1 %v5431_v53 }
 0x4d8   :  { %4288 = vmatprep.subr.bf16.mxu1 %v4488_v49 }
 0x4db   :  { %4290 = vmatpush3.bf16.msra.mxu1 %v5437_v61 }
 0x4de   :  { %3761 = vmatmul.mubr.f32.vlgmr.msra.gmra.mrb[8].mxu1 %v5536_v23 }
 0x5b1   :  { %v2896_v25 = vpop.f32.mrb[8].mxu1 }
 0x5b2   :  { %v4294_v52 = vadd.f32 %v2927_v8, %v2896_v25  ;;  %v3762_v41 = vpop.f32.mrb[9].mxu1 }
 0x5b4   :  { %v2928_v44 = vclamps-f32 %v4294_v52, 1.0 }
 0x5b6   :  { %v2905_v53 = vmul.f32 %v2928_v44, %v2928_v44 }
 0x5b8   :  { %v2906_v49 = vsel %vm2904_vm2, %v4294_v52, %v2905_v53 }
 0x5b9   :  { %2907 = vst [vmem:[#allocation11] sm:$0xff] %v2906_v49 }
 0x5ba   :  { %4459 = shalt.err (!%p4456_p2)
}
 0x5bb   :  { %s4460_s1 = scalar_lea.hbm %s5665_s9, 128 }
 0x5bc   :  { %p4461_p3 = scmp.ne.s32.totalorder %s5665_s9, %s4460_s1  ;;  %p4464_p4 = scmp.lt.u32.totalorder %s4460_s1, %s5665_s9 }
 0x5be   :  { %p4466_p5 = pnand %p4464_p4, %p4461_p3 }
 0x5c0   :  { %4469 = shalt.err (!%p4466_p5)
}
 0x5c1   :  { %2917 = dma.vmem_to_hbm [thread:$0]  %s2915_s11, 128, %s5665_s9, [#allocation4]  }
 0x5c2   :  { %4476 = dma.done.wait [#allocation4], 128  }
 0x5c3   :  { %4477 = vsyncadd [#allocation4], 4294967168 }
 0x5c4   :  { %2921 = vsyncpa [#allocation3], 1 }
 0x5c5   :  { %2922 = vsyncpa [#allocation6], 1 }
 0x5c6   :  { %2923 = vsyncpa [#allocation9], 1 }
 0x5c7   :  { %2924 = vsyncpa [#allocation4], 1 }

</bundles_post_ra>
